<compile_context>
chip_gen: v7x
topology: tpu7x:2x2x1
jax: 0.10.0
libtpu: 0.0.40
codegen_flags: <defaults>
</compile_context>

<pallas_src>
import math
import jax
import jax.numpy as jnp
from jax.experimental import pallas as pl
from jax.experimental.pallas import tpu as pltpu

PARAM_ORDER = ("w_in_x", "w_in_z", "conv_w", "conv_b", "w_dt_fold", "dt_b",
               "A_T", "d_skip", "w_BC", "w_out")


def _mamba_stack_kernel(x_ref, w_in_x_ref, w_in_z_ref, conv_w_ref, conv_b_ref,
                        w_dtf_ref, dt_b_ref, A_ref, d_skip_ref,
                        w_BC_ref, w_out_ref,
                        o_ref,
                        u_s, delta_s, dbu_s, bc_s, y_s, dA_s, dBu_s):
    """One Mamba layer for one batch tile.  grid = (batch_tiles, num_layers)."""
    layer = pl.program_id(1)
    bt, L, D = x_ref.shape
    d_inner = w_in_x_ref.shape[1]
    d_state = A_ref.shape[0]
    d_conv = conv_w_ref.shape[0]
    M = bt * L
    CH = dA_s.shape[1]                       # scan chunk length (divides L)

    # Output block index is constant along the layer axis -> o_ref stays resident
    # in VMEM and carries the activation from layer to layer (no HBM round-trip).
    @pl.when(layer == 0)
    def _():
        o_ref[...] = x_ref[...]

    xin_bf = o_ref[...].reshape(M, D).astype(jnp.bfloat16)

    # ---- in_proj x-branch (bf16 MXU, f32 accumulation); z-gate matmul is done
    #      after the scan so nothing large stays live across the recurrence.
    xu = jnp.dot(xin_bf, w_in_x_ref[...], preferred_element_type=jnp.float32)
    u3 = xu.reshape(bt, L, d_inner)

    # ---- causal depthwise conv1d via pltpu.roll + iota mask (no padded scratch,
    #      no sublane-offset slices).  output[t] = sum_k w[k] * u[t - (d_conv-1-k)]
    t_idx = jax.lax.broadcasted_iota(jnp.int32, (bt, L, d_inner), 1)
    x_conv = u3 * conv_w_ref[d_conv - 1:d_conv, :].reshape(1, 1, d_inner)
    for k in range(d_conv - 1):                       # static taps, s = 1..d_conv-1
        s = d_conv - 1 - k
        w_k = conv_w_ref[k:k + 1, :].reshape(1, 1, d_inner)
        rolled = pltpu.roll(u3, shift=s, axis=1)      # XLU sublane rotation
        x_conv = x_conv + jnp.where(t_idx >= s, rolled, 0.0) * w_k
    x_conv = x_conv + conv_b_ref[...].reshape(1, 1, d_inner)
    # SiLU with tanh-form sigmoid: x * 0.5*(1+tanh(0.5x))  (one EUP op)
    u_act3 = x_conv * (0.5 * (1.0 + jnp.tanh(0.5 * x_conv)))
    u_s[...] = u_act3
    u2 = u_act3.reshape(M, d_inner)

    # ---- delta: dt_proj folded into x_proj's dt block offline -> one f32 matmul
    delta_pre = jnp.dot(u2, w_dtf_ref[...],
                        preferred_element_type=jnp.float32) + dt_b_ref[...]
    delta = jnp.where(delta_pre > 20.0, delta_pre,
                      jnp.log1p(jnp.exp(jnp.minimum(delta_pre, 20.0))))  # softplus

    # ---- fused [B | C] projection: one MXU launch, N = 2*d_state, f32
    bc = jnp.dot(u2, w_BC_ref[...], preferred_element_type=jnp.float32)

    delta_s[...] = delta.reshape(bt, L, d_inner)
    dbu_s[...] = (delta * u2).reshape(bt, L, d_inner)
    bc_s[...] = bc.reshape(bt, L, 2 * d_state)

    A = A_ref[...]                                    # (d_state, d_inner), = -exp(A_log)

    # ---- selective scan, chunked by CH timesteps.
    #      Per chunk: hoist exp(delta⊗A) and B⊗(delta·u) into scratches (EUP/VPU
    #      work off the serial chain), then run the CH-step recurrence unrolled
    #      with full-tile reads; h states overwrite dBu_s and the C·h contraction
    #      is one batched mul + sublane-reduce per chunk.
    def chunk_body(c, h):
        t0 = pl.multiple_of(c * CH, CH)
        dt_c = delta_s[:, pl.ds(t0, CH), :]           # (bt, CH, d_inner)
        dbu_c = dbu_s[:, pl.ds(t0, CH), :]            # (bt, CH, d_inner)
        bc_c = bc_s[:, pl.ds(t0, CH), :]              # (bt, CH, 2*d_state)
        b_c = bc_c[:, :, :d_state]
        c_c = bc_c[:, :, d_state:]
        dA_s[...] = jnp.exp(dt_c[:, :, None, :] * A[None, None, :, :])
        dBu_s[...] = b_c[:, :, :, None] * dbu_c[:, :, None, :]
        for t in range(CH):                           # unrolled, static indices
            h = dA_s[:, t] * h + dBu_s[:, t]          # (bt, d_state, d_inner)
            dBu_s[:, t] = h                           # reuse scratch: store h state
        y_chunk = jnp.sum(c_c[:, :, :, None] * dBu_s[...], axis=2)  # (bt, CH, d_inner)
        y_s[:, pl.ds(t0, CH), :] = y_chunk            # one aligned store per chunk
        return h

    h0 = jnp.zeros((bt, d_state, d_inner), jnp.float32)
    jax.lax.fori_loop(0, L // CH, chunk_body, h0)

    # ---- skip (D * u), SiLU(z) gate, out_proj
    u2b = u_s[...].reshape(M, d_inner)
    y = y_s[...].reshape(M, d_inner) + u2b * d_skip_ref[...]
    zin = o_ref[...].reshape(M, D).astype(jnp.bfloat16)
    z = jnp.dot(zin, w_in_z_ref[...], preferred_element_type=jnp.float32)
    y = y * (z * (0.5 * (1.0 + jnp.tanh(0.5 * z))))
    out = jnp.dot(y.astype(jnp.bfloat16), w_out_ref[...],
                  preferred_element_type=jnp.float32)            # (M, D)
    o_ref[...] = out.reshape(bt, L, D)


def _prepare_layer(p):
    """Convert raw mamba-style params into the kernel's lane-friendly form."""
    d_inner = p["dt_proj_wT"].shape[1]
    dt_rank = p["dt_proj_wT"].shape[0]
    d_state = p["A_logT"].shape[0]
    return {
        "w_in_x": p["in_proj_wT"][:, :d_inner].astype(jnp.bfloat16),
        "w_in_z": p["in_proj_wT"][:, d_inner:].astype(jnp.bfloat16),
        "conv_w": p["conv_wT"].astype(jnp.float32),
        "conv_b": p["conv_b"].astype(jnp.float32),
        # fold dt_proj (K=dt_rank) into x_proj's dt block: u @ (Wx_dt @ Wdt) + b
        # (kept in f32: the delta -> softplus -> exp path is rounding-sensitive)
        "w_dt_fold": (p["x_proj_wT"][:, :dt_rank] @ p["dt_proj_wT"]).astype(jnp.float32),
        "dt_b": p["dt_proj_b"].astype(jnp.float32),
        "A_T": (-jnp.exp(p["A_logT"])).astype(jnp.float32),     # A = -exp(A_log)
        "d_skip": p["D"].astype(jnp.float32),
        # fused [B | C] projection weights, f32
        "w_BC": p["x_proj_wT"][:, dt_rank:dt_rank + 2 * d_state].astype(jnp.float32),
        "w_out": p["out_proj_wT"].astype(jnp.bfloat16),
    }


def _pick_batch_tile(B, L):
    # Target ~128 MXU rows per tile, but keep the parallel grid axis >= 2 when
    # B >= 2 so both v7x TensorCores get work.
    bt = max(1, min(B, 128 // max(L, 1)))
    if B >= 2:
        bt = max(1, min(bt, B // 2))
    while B % bt:
        bt -= 1
    return bt


def _pick_scan_chunk(L):
    for c in (8, 4, 2):
        if L % c == 0:
            return c
    return 1


def _padded_bytes(shape, dtype):
    """VMEM footprint of one buffer, with (8,128) tile padding on last two dims."""
    s = list(shape)
    if len(s) >= 1:
        s[-1] = -(-s[-1] // 128) * 128
    if len(s) >= 2:
        s[-2] = -(-s[-2] // 8) * 8
    return math.prod(s) * jnp.dtype(dtype).itemsize


def mamba_block(x, layers_params):
    """MambaBlock.forward: all `num` Mamba layers fused into one pallas_call."""
    x = x.astype(jnp.float32)
    B, L, D = x.shape
    num = len(layers_params)
    prepped = [_prepare_layer(p) for p in layers_params]
    stacked = {k: jnp.stack([lp[k] for lp in prepped], axis=0) for k in PARAM_ORDER}

    d_inner = stacked["w_in_x"].shape[2]
    d_state = stacked["A_T"].shape[1]
    d_conv = stacked["conv_w"].shape[1]

    bt = _pick_batch_tile(B, L)
    ch = _pick_scan_chunk(L)
    grid = (B // bt, num)

    def _w_spec(arr):
        s1, s2 = arr.shape[1], arr.shape[2]
        return pl.BlockSpec((None, s1, s2), lambda bi, li: (li, 0, 0))

    x_spec = pl.BlockSpec((bt, L, D), lambda bi, li: (bi, 0, 0))
    in_specs = [x_spec] + [_w_spec(stacked[k]) for k in PARAM_ORDER]
    out_spec = pl.BlockSpec((bt, L, D), lambda bi, li: (bi, 0, 0))

    # TODO(synk): for production shapes (D~2k, d_inner~4k, L~2k) add an extra
    # "arbitrary" L-chunk grid axis (h carried in a scratch) so the per-layer
    # scratches below fit v7x's 64 MiB VMEM; at these sizes they fit directly.
    scratch_defs = [
        ((bt, L, d_inner), jnp.float32),               # u = silu(conv(x))
        ((bt, L, d_inner), jnp.float32),               # delta
        ((bt, L, d_inner), jnp.float32),               # delta * u
        ((bt, L, 2 * d_state), jnp.float32),           # fused [B | C]
        ((bt, L, d_inner), jnp.float32),               # y (scan output)
        ((bt, ch, d_state, d_inner), jnp.float32),     # exp(delta ⊗ A) per chunk
        ((bt, ch, d_state, d_inner), jnp.float32),     # B⊗(delta·u) / h states
    ]
    scratch_shapes = [pltpu.VMEM(s, d) for s, d in scratch_defs]

    # Derive the VMEM budget from actual block + scratch footprints instead of a
    # fixed constant (double-buffered weights + in/out blocks + scratches).
    w_block_bytes = sum(_padded_bytes(stacked[k].shape[1:], stacked[k].dtype)
                        for k in PARAM_ORDER)
    io_bytes = _padded_bytes((bt, L, D), jnp.float32)
    scratch_bytes = sum(_padded_bytes(s, d) for s, d in scratch_defs)
    vmem_need = 2 * w_block_bytes + 4 * io_bytes + scratch_bytes
    vmem_limit = int(max(32 << 20, min(64 << 20, 2 * vmem_need + (8 << 20))))

    # Advisory cost estimate so XLA schedules around the long fused call.
    Mtot = B * L
    flops_per_layer = (
        2 * Mtot * D * 2 * d_inner          # in_proj (x-branch + z-gate)
        + 2 * Mtot * d_inner * d_conv       # depthwise conv
        + 2 * Mtot * d_inner * d_inner      # folded dt projection
        + 2 * Mtot * d_inner * 2 * d_state  # fused B|C projection
        + 6 * Mtot * d_state * d_inner      # selective scan recurrence
        + 2 * Mtot * d_inner * D            # out_proj
        + 10 * Mtot * d_inner               # activations / gate / skip
    )
    trans_per_layer = 4 * Mtot * d_inner + Mtot * d_state * d_inner
    bytes_accessed = 2 * B * L * D * 4 + num * w_block_bytes
    cost = pl.CostEstimate(flops=int(num * flops_per_layer),
                           transcendentals=int(num * trans_per_layer),
                           bytes_accessed=int(bytes_accessed))

    return pl.pallas_call(
        _mamba_stack_kernel,
        out_shape=jax.ShapeDtypeStruct((B, L, D), jnp.float32),
        grid_spec=pltpu.PrefetchScalarGridSpec(
            num_scalar_prefetch=0,
            grid=grid,
            in_specs=in_specs,
            out_specs=out_spec,
            scratch_shapes=scratch_shapes,
        ),
        compiler_params=pltpu.CompilerParams(
            dimension_semantics=("parallel", "arbitrary"),
            vmem_limit_bytes=vmem_limit,
        ),
        cost_estimate=cost,
    )(x, *[stacked[k] for k in PARAM_ORDER])


def init_mamba_params(key, dim, d_state=16, d_conv=4, expand=2):
    """Deterministic synthetic init matching mamba_ssm Mamba parameter shapes."""
    d_inner = expand * dim
    dt_rank = math.ceil(dim / 16)
    ks = jax.random.split(key, 7)
    s = 0.1
    a_col = jnp.log(jnp.arange(1, d_state + 1, dtype=jnp.float32))[:, None]
    return {
        # nn.Linear(dim, 2*d_inner, bias=False).weight.T
        "in_proj_wT": jax.random.normal(ks[0], (dim, 2 * d_inner), jnp.float32) * s,
        # depthwise Conv1d(d_inner, d_inner, d_conv, groups=d_inner).weight -> (d_conv, d_inner)
        "conv_wT": jax.random.normal(ks[1], (d_conv, d_inner), jnp.float32) * s,
        "conv_b": jax.random.normal(ks[2], (1, d_inner), jnp.float32) * s,
        # nn.Linear(d_inner, dt_rank + 2*d_state, bias=False).weight.T
        "x_proj_wT": jax.random.normal(ks[3], (d_inner, dt_rank + 2 * d_state), jnp.float32) * s,
        # nn.Linear(dt_rank, d_inner, bias=True)
        "dt_proj_wT": jax.random.normal(ks[4], (dt_rank, d_inner), jnp.float32) * s,
        "dt_proj_b": jax.random.normal(ks[5], (1, d_inner), jnp.float32) * s,
        # A_log stored transposed: (d_state, d_inner) with log(1..d_state) per channel
        "A_logT": jnp.tile(a_col, (1, d_inner)),
        "D": jnp.ones((1, d_inner), jnp.float32),
        # nn.Linear(d_inner, dim, bias=False).weight.T
        "out_proj_wT": jax.random.normal(ks[6], (d_inner, dim), jnp.float32) * s,
    }


if __name__ == "__main__":
    dim, num = 32, 8          # MambaBlock(dim=32, num=8)
    B, L = 2, 8
    key = jax.random.PRNGKey(0)
    kx, kp = jax.random.split(key)
    x = jax.random.normal(kx, (B, L, dim), jnp.float32)
    layer_keys = jax.random.split(kp, num)
    layers_params = [init_mamba_params(k, dim) for k in layer_keys]

    out = mamba_block(x, layers_params)
    out = jax.block_until_ready(out)
    assert out.shape == (B, L, dim) and out.dtype == jnp.float32
    assert bool(jnp.all(jnp.isfinite(out)))
    print("KERNEL_OK")
</pallas_src>

<mosaic_0001>
module attributes {stable_mosaic.version = 11 : i64} {
  func.func @_mamba_stack_kernel(%arg0: i32, %arg1: i32, %arg2: memref<1x8x32xf32, #tpu.memory_space<vmem>>, %arg3: memref<1x32x64xbf16, #tpu.memory_space<vmem>>, %arg4: memref<1x32x64xbf16, #tpu.memory_space<vmem>>, %arg5: memref<1x4x64xf32, #tpu.memory_space<vmem>>, %arg6: memref<1x1x64xf32, #tpu.memory_space<vmem>>, %arg7: memref<1x64x64xf32, #tpu.memory_space<vmem>>, %arg8: memref<1x1x64xf32, #tpu.memory_space<vmem>>, %arg9: memref<1x16x64xf32, #tpu.memory_space<vmem>>, %arg10: memref<1x1x64xf32, #tpu.memory_space<vmem>>, %arg11: memref<1x64x32xf32, #tpu.memory_space<vmem>>, %arg12: memref<1x64x32xbf16, #tpu.memory_space<vmem>>, %arg13: memref<1x8x32xf32, #tpu.memory_space<vmem>>, %arg14: memref<1x8x64xf32, #tpu.memory_space<vmem>>, %arg15: memref<1x8x64xf32, #tpu.memory_space<vmem>>, %arg16: memref<1x8x64xf32, #tpu.memory_space<vmem>>, %arg17: memref<1x8x32xf32, #tpu.memory_space<vmem>>, %arg18: memref<1x8x64xf32, #tpu.memory_space<vmem>>, %arg19: memref<1x8x16x64xf32, #tpu.memory_space<vmem>>, %arg20: memref<1x8x16x64xf32, #tpu.memory_space<vmem>>) attributes {dimension_semantics = [#tpu.dimension_semantics<parallel>, #tpu.dimension_semantics<arbitrary>], iteration_bounds = array<i64: 2, 8>, scalar_prefetch = 0 : i64, scratch_operands = 7 : i64, tpu.core_type = #tpu.core_type<tc>, window_params = [{transform_indices = @transform_0, window_bounds = array<i64: 1, 8, 32>}, {transform_indices = @transform_1, window_bounds = array<i64: 1, 32, 64>}, {transform_indices = @transform_2, window_bounds = array<i64: 1, 32, 64>}, {transform_indices = @transform_3, window_bounds = array<i64: 1, 4, 64>}, {transform_indices = @transform_4, window_bounds = array<i64: 1, 1, 64>}, {transform_indices = @transform_5, window_bounds = array<i64: 1, 64, 64>}, {transform_indices = @transform_6, window_bounds = array<i64: 1, 1, 64>}, {transform_indices = @transform_7, window_bounds = array<i64: 1, 16, 64>}, {transform_indices = @transform_8, window_bounds = array<i64: 1, 1, 64>}, {transform_indices = @transform_9, window_bounds = array<i64: 1, 64, 32>}, {transform_indices = @transform_10, window_bounds = array<i64: 1, 64, 32>}, {transform_indices = @transform_11, window_bounds = array<i64: 1, 8, 32>}]} {
    %c0_i32 = arith.constant 0 : i32
    %0 = arith.cmpi eq, %arg1, %c0_i32 : i32
    %1 = arith.extui %0 : i1 to i32
    %c0_i32_0 = arith.constant 0 : i32
    %2 = arith.cmpi ne, %1, %c0_i32_0 : i32
    scf.if %2 {
      %c0_197 = arith.constant 0 : index
      %c0_198 = arith.constant 0 : index
      %c0_199 = arith.constant 0 : index
      %223 = vector.load %arg2[%c0_197, %c0_198, %c0_199] : memref<1x8x32xf32, #tpu.memory_space<vmem>>, vector<1x8x32xf32>
      %c0_200 = arith.constant 0 : index
      %c0_201 = arith.constant 0 : index
      %c0_202 = arith.constant 0 : index
      %224 = vector.load %arg13[%c0_200, %c0_201, %c0_202] : memref<1x8x32xf32, #tpu.memory_space<vmem>>, vector<1x8x32xf32>
      tpu.vector_store %arg13[%c0_200, %c0_201, %c0_202], %223 {strides = array<i32>} : memref<1x8x32xf32, #tpu.memory_space<vmem>>, vector<1x8x32xf32>,
    } else {
    }
    %c0 = arith.constant 0 : index
    %c0_1 = arith.constant 0 : index
    %c0_2 = arith.constant 0 : index
    %3 = vector.load %arg13[%c0, %c0_1, %c0_2] : memref<1x8x32xf32, #tpu.memory_space<vmem>>, vector<1x8x32xf32>
    %4 = vector.shape_cast %3 : vector<1x8x32xf32> to vector<8x32xf32>
    %5 = arith.truncf %4 : vector<8x32xf32> to vector<8x32xbf16>
    %c0_3 = arith.constant 0 : index
    %c0_4 = arith.constant 0 : index
    %c0_5 = arith.constant 0 : index
    %6 = vector.load %arg3[%c0_3, %c0_4, %c0_5] : memref<1x32x64xbf16, #tpu.memory_space<vmem>>, vector<1x32x64xbf16>
    %7 = vector.shape_cast %6 : vector<1x32x64xbf16> to vector<32x64xbf16>
    %cst = arith.constant dense<0.000000e+00> : vector<8x64xf32>
    %8 = tpu.matmul %5, %7, %cst {dimension_numbers = #tpu.dot_dimension_numbers<[1], [0], [0], [1], [0, 0, 1, 1], [], []>} : vector<8x32xbf16>, vector<32x64xbf16>, vector<8x64xf32> -> vector<8x64xf32>
    %9 = vector.shape_cast %8 : vector<8x64xf32> to vector<1x8x64xf32>
    %10 = tpu.iota {dimensions = array<i32: 1>} : vector<1x8x64xi32>
    %c0_6 = arith.constant 0 : index
    %c3 = arith.constant 3 : index
    %c0_7 = arith.constant 0 : index
    %11 = vector.load %arg5[%c0_6, %c3, %c0_7] : memref<1x4x64xf32, #tpu.memory_space<vmem>>, vector<1x1x64xf32>
    %12 = vector.shape_cast %11 : vector<1x1x64xf32> to vector<1x64xf32>
    %13 = vector.shape_cast %12 : vector<1x64xf32> to vector<1x1x64xf32>
    %14 = vector.broadcast %13 : vector<1x1x64xf32> to vector<1x8x64xf32>
    %15 = arith.mulf %9, %14 : vector<1x8x64xf32>
    %c0_8 = arith.constant 0 : index
    %c0_9 = arith.constant 0 : index
    %c0_10 = arith.constant 0 : index
    %16 = vector.load %arg5[%c0_8, %c0_9, %c0_10] : memref<1x4x64xf32, #tpu.memory_space<vmem>>, vector<1x1x64xf32>
    %17 = vector.shape_cast %16 : vector<1x1x64xf32> to vector<1x64xf32>
    %18 = vector.shape_cast %17 : vector<1x64xf32> to vector<1x1x64xf32>
    %c3_i32 = arith.constant 3 : i32
    %19 = tpu.dynamic_rotate %9 by %c3_i32 dim 1 : vector<1x8x64xf32>, i32 -> vector<1x8x64xf32>
    %c3_i32_11 = arith.constant 3 : i32
    %20 = vector.broadcast %c3_i32_11 : i32 to vector<1x8x64xi32>
    %21 = arith.cmpi sge, %10, %20 : vector<1x8x64xi32>
    %cst_12 = arith.constant 0.000000e+00 : f32
    %22 = vector.broadcast %cst_12 : f32 to vector<1x8x64xf32>
    %23 = arith.select %21, %19, %22 : vector<1x8x64xi1>, vector<1x8x64xf32>
    %24 = vector.broadcast %18 : vector<1x1x64xf32> to vector<1x8x64xf32>
    %25 = arith.mulf %23, %24 : vector<1x8x64xf32>
    %26 = arith.addf %15, %25 : vector<1x8x64xf32>
    %c0_13 = arith.constant 0 : index
    %c1 = arith.constant 1 : index
    %c0_14 = arith.constant 0 : index
    %27 = vector.load %arg5[%c0_13, %c1, %c0_14] : memref<1x4x64xf32, #tpu.memory_space<vmem>>, vector<1x1x64xf32>
    %28 = vector.shape_cast %27 : vector<1x1x64xf32> to vector<1x64xf32>
    %29 = vector.shape_cast %28 : vector<1x64xf32> to vector<1x1x64xf32>
    %c2_i32 = arith.constant 2 : i32
    %30 = tpu.dynamic_rotate %9 by %c2_i32 dim 1 : vector<1x8x64xf32>, i32 -> vector<1x8x64xf32>
    %c2_i32_15 = arith.constant 2 : i32
    %31 = vector.broadcast %c2_i32_15 : i32 to vector<1x8x64xi32>
    %32 = arith.cmpi sge, %10, %31 : vector<1x8x64xi32>
    %cst_16 = arith.constant 0.000000e+00 : f32
    %33 = vector.broadcast %cst_16 : f32 to vector<1x8x64xf32>
    %34 = arith.select %32, %30, %33 : vector<1x8x64xi1>, vector<1x8x64xf32>
    %35 = vector.broadcast %29 : vector<1x1x64xf32> to vector<1x8x64xf32>
    %36 = arith.mulf %34, %35 : vector<1x8x64xf32>
    %37 = arith.addf %26, %36 : vector<1x8x64xf32>
    %c0_17 = arith.constant 0 : index
    %c2 = arith.constant 2 : index
    %c0_18 = arith.constant 0 : index
    %38 = vector.load %arg5[%c0_17, %c2, %c0_18] : memref<1x4x64xf32, #tpu.memory_space<vmem>>, vector<1x1x64xf32>
    %39 = vector.shape_cast %38 : vector<1x1x64xf32> to vector<1x64xf32>
    %40 = vector.shape_cast %39 : vector<1x64xf32> to vector<1x1x64xf32>
    %c1_i32 = arith.constant 1 : i32
    %41 = tpu.dynamic_rotate %9 by %c1_i32 dim 1 : vector<1x8x64xf32>, i32 -> vector<1x8x64xf32>
    %c1_i32_19 = arith.constant 1 : i32
    %42 = vector.broadcast %c1_i32_19 : i32 to vector<1x8x64xi32>
    %43 = arith.cmpi sge, %10, %42 : vector<1x8x64xi32>
    %cst_20 = arith.constant 0.000000e+00 : f32
    %44 = vector.broadcast %cst_20 : f32 to vector<1x8x64xf32>
    %45 = arith.select %43, %41, %44 : vector<1x8x64xi1>, vector<1x8x64xf32>
    %46 = vector.broadcast %40 : vector<1x1x64xf32> to vector<1x8x64xf32>
    %47 = arith.mulf %45, %46 : vector<1x8x64xf32>
    %48 = arith.addf %37, %47 : vector<1x8x64xf32>
    %c0_21 = arith.constant 0 : index
    %c0_22 = arith.constant 0 : index
    %c0_23 = arith.constant 0 : index
    %49 = vector.load %arg6[%c0_21, %c0_22, %c0_23] : memref<1x1x64xf32, #tpu.memory_space<vmem>>, vector<1x1x64xf32>
    %50 = vector.shape_cast %49 : vector<1x1x64xf32> to vector<1x64xf32>
    %51 = vector.shape_cast %50 : vector<1x64xf32> to vector<1x1x64xf32>
    %52 = vector.broadcast %51 : vector<1x1x64xf32> to vector<1x8x64xf32>
    %53 = arith.addf %48, %52 : vector<1x8x64xf32>
    %cst_24 = arith.constant 5.000000e-01 : f32
    %54 = vector.broadcast %cst_24 : f32 to vector<1x8x64xf32>
    %55 = arith.mulf %54, %53 : vector<1x8x64xf32>
    %56 = math.tanh %55 : vector<1x8x64xf32>
    %cst_25 = arith.constant 1.000000e+00 : f32
    %57 = vector.broadcast %cst_25 : f32 to vector<1x8x64xf32>
    %58 = arith.addf %57, %56 : vector<1x8x64xf32>
    %cst_26 = arith.constant 5.000000e-01 : f32
    %59 = vector.broadcast %cst_26 : f32 to vector<1x8x64xf32>
    %60 = arith.mulf %59, %58 : vector<1x8x64xf32>
    %61 = arith.mulf %53, %60 : vector<1x8x64xf32>
    %c0_27 = arith.constant 0 : index
    %c0_28 = arith.constant 0 : index
    %c0_29 = arith.constant 0 : index
    %62 = vector.load %arg14[%c0_27, %c0_28, %c0_29] : memref<1x8x64xf32, #tpu.memory_space<vmem>>, vector<1x8x64xf32>
    tpu.vector_store %arg14[%c0_27, %c0_28, %c0_29], %61 {strides = array<i32>} : memref<1x8x64xf32, #tpu.memory_space<vmem>>, vector<1x8x64xf32>,
    %63 = vector.shape_cast %61 : vector<1x8x64xf32> to vector<8x64xf32>
    %c0_30 = arith.constant 0 : index
    %c0_31 = arith.constant 0 : index
    %c0_32 = arith.constant 0 : index
    %64 = vector.load %arg7[%c0_30, %c0_31, %c0_32] : memref<1x64x64xf32, #tpu.memory_space<vmem>>, vector<1x64x64xf32>
    %65 = vector.shape_cast %64 : vector<1x64x64xf32> to vector<64x64xf32>
    %cst_33 = arith.constant dense<0.000000e+00> : vector<8x64xf32>
    %66 = tpu.matmul %63, %65, %cst_33 {dimension_numbers = #tpu.dot_dimension_numbers<[1], [0], [0], [1], [0, 0, 1, 1], [], []>} : vector<8x64xf32>, vector<64x64xf32>, vector<8x64xf32> -> vector<8x64xf32>
    %c0_34 = arith.constant 0 : index
    %c0_35 = arith.constant 0 : index
    %c0_36 = arith.constant 0 : index
    %67 = vector.load %arg8[%c0_34, %c0_35, %c0_36] : memref<1x1x64xf32, #tpu.memory_space<vmem>>, vector<1x1x64xf32>
    %68 = vector.shape_cast %67 : vector<1x1x64xf32> to vector<1x64xf32>
    %69 = vector.broadcast %68 : vector<1x64xf32> to vector<8x64xf32>
    %70 = arith.addf %66, %69 : vector<8x64xf32>
    %cst_37 = arith.constant 2.000000e+01 : f32
    %71 = vector.broadcast %cst_37 : f32 to vector<8x64xf32>
    %72 = arith.cmpf ogt, %70, %71 : vector<8x64xf32>
    %cst_38 = arith.constant 2.000000e+01 : f32
    %73 = vector.broadcast %cst_38 : f32 to vector<8x64xf32>
    %74 = arith.minimumf %70, %73 : vector<8x64xf32>
    %75 = math.exp %74 : vector<8x64xf32>
    %76 = math.log1p %75 : vector<8x64xf32>
    %77 = arith.select %72, %70, %76 : vector<8x64xi1>, vector<8x64xf32>
    %c0_39 = arith.constant 0 : index
    %c0_40 = arith.constant 0 : index
    %c0_41 = arith.constant 0 : index
    %78 = vector.load %arg11[%c0_39, %c0_40, %c0_41] : memref<1x64x32xf32, #tpu.memory_space<vmem>>, vector<1x64x32xf32>
    %79 = vector.shape_cast %78 : vector<1x64x32xf32> to vector<64x32xf32>
    %cst_42 = arith.constant dense<0.000000e+00> : vector<8x32xf32>
    %80 = tpu.matmul %63, %79, %cst_42 {dimension_numbers = #tpu.dot_dimension_numbers<[1], [0], [0], [1], [0, 0, 1, 1], [], []>} : vector<8x64xf32>, vector<64x32xf32>, vector<8x32xf32> -> vector<8x32xf32>
    %81 = vector.shape_cast %77 : vector<8x64xf32> to vector<1x8x64xf32>
    %c0_43 = arith.constant 0 : index
    %c0_44 = arith.constant 0 : index
    %c0_45 = arith.constant 0 : index
    %82 = vector.load %arg15[%c0_43, %c0_44, %c0_45] : memref<1x8x64xf32, #tpu.memory_space<vmem>>, vector<1x8x64xf32>
    tpu.vector_store %arg15[%c0_43, %c0_44, %c0_45], %81 {strides = array<i32>} : memref<1x8x64xf32, #tpu.memory_space<vmem>>, vector<1x8x64xf32>,
    %83 = arith.mulf %77, %63 : vector<8x64xf32>
    %84 = vector.shape_cast %83 : vector<8x64xf32> to vector<1x8x64xf32>
    %c0_46 = arith.constant 0 : index
    %c0_47 = arith.constant 0 : index
    %c0_48 = arith.constant 0 : index
    %85 = vector.load %arg16[%c0_46, %c0_47, %c0_48] : memref<1x8x64xf32, #tpu.memory_space<vmem>>, vector<1x8x64xf32>
    tpu.vector_store %arg16[%c0_46, %c0_47, %c0_48], %84 {strides = array<i32>} : memref<1x8x64xf32, #tpu.memory_space<vmem>>, vector<1x8x64xf32>,
    %86 = vector.shape_cast %80 : vector<8x32xf32> to vector<1x8x32xf32>
    %c0_49 = arith.constant 0 : index
    %c0_50 = arith.constant 0 : index
    %c0_51 = arith.constant 0 : index
    %87 = vector.load %arg17[%c0_49, %c0_50, %c0_51] : memref<1x8x32xf32, #tpu.memory_space<vmem>>, vector<1x8x32xf32>
    tpu.vector_store %arg17[%c0_49, %c0_50, %c0_51], %86 {strides = array<i32>} : memref<1x8x32xf32, #tpu.memory_space<vmem>>, vector<1x8x32xf32>,
    %c0_52 = arith.constant 0 : index
    %c0_53 = arith.constant 0 : index
    %c0_54 = arith.constant 0 : index
    %88 = vector.load %arg9[%c0_52, %c0_53, %c0_54] : memref<1x16x64xf32, #tpu.memory_space<vmem>>, vector<1x16x64xf32>
    %89 = vector.shape_cast %88 : vector<1x16x64xf32> to vector<16x64xf32>
    %cst_55 = arith.constant 0.000000e+00 : f32
    %90 = vector.broadcast %cst_55 : f32 to vector<1x16x64xf32>
    %c0_i32_56 = arith.constant 0 : i32
    %c8_i32 = arith.constant 8 : i32
    %91 = arith.muli %c0_i32_56, %c8_i32 : i32
    %92 = tpu.assume_multiple %91, 8 : i32
    %c0_57 = arith.constant 0 : index
    %93 = arith.index_cast %92 : i32 to index
    %c0_58 = arith.constant 0 : index
    %94 = vector.load %arg15[%c0_57, %93, %c0_58] : memref<1x8x64xf32, #tpu.memory_space<vmem>>, vector<1x8x64xf32>
    %c0_59 = arith.constant 0 : index
    %95 = arith.index_cast %92 : i32 to index
    %c0_60 = arith.constant 0 : index
    %96 = vector.load %arg16[%c0_59, %95, %c0_60] : memref<1x8x64xf32, #tpu.memory_space<vmem>>, vector<1x8x64xf32>
    %c0_61 = arith.constant 0 : index
    %97 = arith.index_cast %92 : i32 to index
    %c0_62 = arith.constant 0 : index
    %98 = vector.load %arg17[%c0_61, %97, %c0_62] : memref<1x8x32xf32, #tpu.memory_space<vmem>>, vector<1x8x32xf32>
    %99 = vector.extract_strided_slice %98 {offsets = [0, 0, 0], sizes = [1, 8, 16], strides = [1, 1, 1]} : vector<1x8x32xf32> to vector<1x8x16xf32>
    %100 = vector.extract_strided_slice %98 {offsets = [0, 0, 16], sizes = [1, 8, 16], strides = [1, 1, 1]} : vector<1x8x32xf32> to vector<1x8x16xf32>
    %101 = vector.shape_cast %94 : vector<1x8x64xf32> to vector<1x8x1x64xf32>
    %102 = vector.shape_cast %89 : vector<16x64xf32> to vector<1x1x16x64xf32>
    %103 = vector.broadcast %101 : vector<1x8x1x64xf32> to vector<1x8x16x64xf32>
    %104 = vector.broadcast %102 : vector<1x1x16x64xf32> to vector<1x8x16x64xf32>
    %105 = arith.mulf %103, %104 : vector<1x8x16x64xf32>
    %106 = math.exp %105 : vector<1x8x16x64xf32>
    %c0_63 = arith.constant 0 : index
    %c0_64 = arith.constant 0 : index
    %c0_65 = arith.constant 0 : index
    %c0_66 = arith.constant 0 : index
    %107 = vector.load %arg19[%c0_63, %c0_64, %c0_65, %c0_66] : memref<1x8x16x64xf32, #tpu.memory_space<vmem>>, vector<1x8x16x64xf32>
    tpu.vector_store %arg19[%c0_63, %c0_64, %c0_65, %c0_66], %106 {strides = array<i32>} : memref<1x8x16x64xf32, #tpu.memory_space<vmem>>, vector<1x8x16x64xf32>,
    %108 = vector.shape_cast %99 : vector<1x8x16xf32> to vector<1x8x16x1xf32>
    %109 = vector.shape_cast %96 : vector<1x8x64xf32> to vector<1x8x1x64xf32>
    %110 = vector.broadcast %108 : vector<1x8x16x1xf32> to vector<1x8x16x64xf32>
    %111 = vector.broadcast %109 : vector<1x8x1x64xf32> to vector<1x8x16x64xf32>
    %112 = arith.mulf %110, %111 : vector<1x8x16x64xf32>
    %c0_67 = arith.constant 0 : index
    %c0_68 = arith.constant 0 : index
    %c0_69 = arith.constant 0 : index
    %c0_70 = arith.constant 0 : index
    %113 = vector.load %arg20[%c0_67, %c0_68, %c0_69, %c0_70] : memref<1x8x16x64xf32, #tpu.memory_space<vmem>>, vector<1x8x16x64xf32>
    tpu.vector_store %arg20[%c0_67, %c0_68, %c0_69, %c0_70], %112 {strides = array<i32>} : memref<1x8x16x64xf32, #tpu.memory_space<vmem>>, vector<1x8x16x64xf32>,
    %c0_71 = arith.constant 0 : index
    %c0_72 = arith.constant 0 : index
    %c0_73 = arith.constant 0 : index
    %c0_74 = arith.constant 0 : index
    %114 = vector.load %arg19[%c0_71, %c0_72, %c0_73, %c0_74] : memref<1x8x16x64xf32, #tpu.memory_space<vmem>>, vector<1x1x16x64xf32>
    %115 = vector.shape_cast %114 : vector<1x1x16x64xf32> to vector<1x16x64xf32>
    %116 = arith.mulf %115, %90 : vector<1x16x64xf32>
    %c0_75 = arith.constant 0 : index
    %c0_76 = arith.constant 0 : index
    %c0_77 = arith.constant 0 : index
    %c0_78 = arith.constant 0 : index
    %117 = vector.load %arg20[%c0_75, %c0_76, %c0_77, %c0_78] : memref<1x8x16x64xf32, #tpu.memory_space<vmem>>, vector<1x1x16x64xf32>
    %118 = vector.shape_cast %117 : vector<1x1x16x64xf32> to vector<1x16x64xf32>
    %119 = arith.addf %116, %118 : vector<1x16x64xf32>
    %c0_79 = arith.constant 0 : index
    %c0_80 = arith.constant 0 : index
    %c0_81 = arith.constant 0 : index
    %c0_82 = arith.constant 0 : index
    %120 = vector.load %arg20[%c0_79, %c0_80, %c0_81, %c0_82] : memref<1x8x16x64xf32, #tpu.memory_space<vmem>>, vector<1x1x16x64xf32>
    %121 = vector.shape_cast %120 : vector<1x1x16x64xf32> to vector<1x16x64xf32>
    %122 = vector.shape_cast %119 : vector<1x16x64xf32> to vector<1x1x16x64xf32>
    tpu.vector_store %arg20[%c0_79, %c0_80, %c0_81, %c0_82], %122 {strides = array<i32>} : memref<1x8x16x64xf32, #tpu.memory_space<vmem>>, vector<1x1x16x64xf32>,
    %c0_83 = arith.constant 0 : index
    %c1_84 = arith.constant 1 : index
    %c0_85 = arith.constant 0 : index
    %c0_86 = arith.constant 0 : index
    %123 = vector.load %arg19[%c0_83, %c1_84, %c0_85, %c0_86] : memref<1x8x16x64xf32, #tpu.memory_space<vmem>>, vector<1x1x16x64xf32>
    %124 = vector.shape_cast %123 : vector<1x1x16x64xf32> to vector<1x16x64xf32>
    %125 = arith.mulf %124, %119 : vector<1x16x64xf32>
    %c0_87 = arith.constant 0 : index
    %c1_88 = arith.constant 1 : index
    %c0_89 = arith.constant 0 : index
    %c0_90 = arith.constant 0 : index
    %126 = vector.load %arg20[%c0_87, %c1_88, %c0_89, %c0_90] : memref<1x8x16x64xf32, #tpu.memory_space<vmem>>, vector<1x1x16x64xf32>
    %127 = vector.shape_cast %126 : vector<1x1x16x64xf32> to vector<1x16x64xf32>
    %128 = arith.addf %125, %127 : vector<1x16x64xf32>
    %c0_91 = arith.constant 0 : index
    %c1_92 = arith.constant 1 : index
    %c0_93 = arith.constant 0 : index
    %c0_94 = arith.constant 0 : index
    %129 = vector.load %arg20[%c0_91, %c1_92, %c0_93, %c0_94] : memref<1x8x16x64xf32, #tpu.memory_space<vmem>>, vector<1x1x16x64xf32>
    %130 = vector.shape_cast %129 : vector<1x1x16x64xf32> to vector<1x16x64xf32>
    %131 = vector.shape_cast %128 : vector<1x16x64xf32> to vector<1x1x16x64xf32>
    tpu.vector_store %arg20[%c0_91, %c1_92, %c0_93, %c0_94], %131 {strides = array<i32>} : memref<1x8x16x64xf32, #tpu.memory_space<vmem>>, vector<1x1x16x64xf32>,
    %c0_95 = arith.constant 0 : index
    %c2_96 = arith.constant 2 : index
    %c0_97 = arith.constant 0 : index
    %c0_98 = arith.constant 0 : index
    %132 = vector.load %arg19[%c0_95, %c2_96, %c0_97, %c0_98] : memref<1x8x16x64xf32, #tpu.memory_space<vmem>>, vector<1x1x16x64xf32>
    %133 = vector.shape_cast %132 : vector<1x1x16x64xf32> to vector<1x16x64xf32>
    %134 = arith.mulf %133, %128 : vector<1x16x64xf32>
    %c0_99 = arith.constant 0 : index
    %c2_100 = arith.constant 2 : index
    %c0_101 = arith.constant 0 : index
    %c0_102 = arith.constant 0 : index
    %135 = vector.load %arg20[%c0_99, %c2_100, %c0_101, %c0_102] : memref<1x8x16x64xf32, #tpu.memory_space<vmem>>, vector<1x1x16x64xf32>
    %136 = vector.shape_cast %135 : vector<1x1x16x64xf32> to vector<1x16x64xf32>
    %137 = arith.addf %134, %136 : vector<1x16x64xf32>
    %c0_103 = arith.constant 0 : index
    %c2_104 = arith.constant 2 : index
    %c0_105 = arith.constant 0 : index
    %c0_106 = arith.constant 0 : index
    %138 = vector.load %arg20[%c0_103, %c2_104, %c0_105, %c0_106] : memref<1x8x16x64xf32, #tpu.memory_space<vmem>>, vector<1x1x16x64xf32>
    %139 = vector.shape_cast %138 : vector<1x1x16x64xf32> to vector<1x16x64xf32>
    %140 = vector.shape_cast %137 : vector<1x16x64xf32> to vector<1x1x16x64xf32>
    tpu.vector_store %arg20[%c0_103, %c2_104, %c0_105, %c0_106], %140 {strides = array<i32>} : memref<1x8x16x64xf32, #tpu.memory_space<vmem>>, vector<1x1x16x64xf32>,
    %c0_107 = arith.constant 0 : index
    %c3_108 = arith.constant 3 : index
    %c0_109 = arith.constant 0 : index
    %c0_110 = arith.constant 0 : index
    %141 = vector.load %arg19[%c0_107, %c3_108, %c0_109, %c0_110] : memref<1x8x16x64xf32, #tpu.memory_space<vmem>>, vector<1x1x16x64xf32>
    %142 = vector.shape_cast %141 : vector<1x1x16x64xf32> to vector<1x16x64xf32>
    %143 = arith.mulf %142, %137 : vector<1x16x64xf32>
    %c0_111 = arith.constant 0 : index
    %c3_112 = arith.constant 3 : index
    %c0_113 = arith.constant 0 : index
    %c0_114 = arith.constant 0 : index
    %144 = vector.load %arg20[%c0_111, %c3_112, %c0_113, %c0_114] : memref<1x8x16x64xf32, #tpu.memory_space<vmem>>, vector<1x1x16x64xf32>
    %145 = vector.shape_cast %144 : vector<1x1x16x64xf32> to vector<1x16x64xf32>
    %146 = arith.addf %143, %145 : vector<1x16x64xf32>
    %c0_115 = arith.constant 0 : index
    %c3_116 = arith.constant 3 : index
    %c0_117 = arith.constant 0 : index
    %c0_118 = arith.constant 0 : index
    %147 = vector.load %arg20[%c0_115, %c3_116, %c0_117, %c0_118] : memref<1x8x16x64xf32, #tpu.memory_space<vmem>>, vector<1x1x16x64xf32>
    %148 = vector.shape_cast %147 : vector<1x1x16x64xf32> to vector<1x16x64xf32>
    %149 = vector.shape_cast %146 : vector<1x16x64xf32> to vector<1x1x16x64xf32>
    tpu.vector_store %arg20[%c0_115, %c3_116, %c0_117, %c0_118], %149 {strides = array<i32>} : memref<1x8x16x64xf32, #tpu.memory_space<vmem>>, vector<1x1x16x64xf32>,
    %c0_119 = arith.constant 0 : index
    %c4 = arith.constant 4 : index
    %c0_120 = arith.constant 0 : index
    %c0_121 = arith.constant 0 : index
    %150 = vector.load %arg19[%c0_119, %c4, %c0_120, %c0_121] : memref<1x8x16x64xf32, #tpu.memory_space<vmem>>, vector<1x1x16x64xf32>
    %151 = vector.shape_cast %150 : vector<1x1x16x64xf32> to vector<1x16x64xf32>
    %152 = arith.mulf %151, %146 : vector<1x16x64xf32>
    %c0_122 = arith.constant 0 : index
    %c4_123 = arith.constant 4 : index
    %c0_124 = arith.constant 0 : index
    %c0_125 = arith.constant 0 : index
    %153 = vector.load %arg20[%c0_122, %c4_123, %c0_124, %c0_125] : memref<1x8x16x64xf32, #tpu.memory_space<vmem>>, vector<1x1x16x64xf32>
    %154 = vector.shape_cast %153 : vector<1x1x16x64xf32> to vector<1x16x64xf32>
    %155 = arith.addf %152, %154 : vector<1x16x64xf32>
    %c0_126 = arith.constant 0 : index
    %c4_127 = arith.constant 4 : index
    %c0_128 = arith.constant 0 : index
    %c0_129 = arith.constant 0 : index
    %156 = vector.load %arg20[%c0_126, %c4_127, %c0_128, %c0_129] : memref<1x8x16x64xf32, #tpu.memory_space<vmem>>, vector<1x1x16x64xf32>
    %157 = vector.shape_cast %156 : vector<1x1x16x64xf32> to vector<1x16x64xf32>
    %158 = vector.shape_cast %155 : vector<1x16x64xf32> to vector<1x1x16x64xf32>
    tpu.vector_store %arg20[%c0_126, %c4_127, %c0_128, %c0_129], %158 {strides = array<i32>} : memref<1x8x16x64xf32, #tpu.memory_space<vmem>>, vector<1x1x16x64xf32>,
    %c0_130 = arith.constant 0 : index
    %c5 = arith.constant 5 : index
    %c0_131 = arith.constant 0 : index
    %c0_132 = arith.constant 0 : index
    %159 = vector.load %arg19[%c0_130, %c5, %c0_131, %c0_132] : memref<1x8x16x64xf32, #tpu.memory_space<vmem>>, vector<1x1x16x64xf32>
    %160 = vector.shape_cast %159 : vector<1x1x16x64xf32> to vector<1x16x64xf32>
    %161 = arith.mulf %160, %155 : vector<1x16x64xf32>
    %c0_133 = arith.constant 0 : index
    %c5_134 = arith.constant 5 : index
    %c0_135 = arith.constant 0 : index
    %c0_136 = arith.constant 0 : index
    %162 = vector.load %arg20[%c0_133, %c5_134, %c0_135, %c0_136] : memref<1x8x16x64xf32, #tpu.memory_space<vmem>>, vector<1x1x16x64xf32>
    %163 = vector.shape_cast %162 : vector<1x1x16x64xf32> to vector<1x16x64xf32>
    %164 = arith.addf %161, %163 : vector<1x16x64xf32>
    %c0_137 = arith.constant 0 : index
    %c5_138 = arith.constant 5 : index
    %c0_139 = arith.constant 0 : index
    %c0_140 = arith.constant 0 : index
    %165 = vector.load %arg20[%c0_137, %c5_138, %c0_139, %c0_140] : memref<1x8x16x64xf32, #tpu.memory_space<vmem>>, vector<1x1x16x64xf32>
    %166 = vector.shape_cast %165 : vector<1x1x16x64xf32> to vector<1x16x64xf32>
    %167 = vector.shape_cast %164 : vector<1x16x64xf32> to vector<1x1x16x64xf32>
    tpu.vector_store %arg20[%c0_137, %c5_138, %c0_139, %c0_140], %167 {strides = array<i32>} : memref<1x8x16x64xf32, #tpu.memory_space<vmem>>, vector<1x1x16x64xf32>,
    %c0_141 = arith.constant 0 : index
    %c6 = arith.constant 6 : index
    %c0_142 = arith.constant 0 : index
    %c0_143 = arith.constant 0 : index
    %168 = vector.load %arg19[%c0_141, %c6, %c0_142, %c0_143] : memref<1x8x16x64xf32, #tpu.memory_space<vmem>>, vector<1x1x16x64xf32>
    %169 = vector.shape_cast %168 : vector<1x1x16x64xf32> to vector<1x16x64xf32>
    %170 = arith.mulf %169, %164 : vector<1x16x64xf32>
    %c0_144 = arith.constant 0 : index
    %c6_145 = arith.constant 6 : index
    %c0_146 = arith.constant 0 : index
    %c0_147 = arith.constant 0 : index
    %171 = vector.load %arg20[%c0_144, %c6_145, %c0_146, %c0_147] : memref<1x8x16x64xf32, #tpu.memory_space<vmem>>, vector<1x1x16x64xf32>
    %172 = vector.shape_cast %171 : vector<1x1x16x64xf32> to vector<1x16x64xf32>
    %173 = arith.addf %170, %172 : vector<1x16x64xf32>
    %c0_148 = arith.constant 0 : index
    %c6_149 = arith.constant 6 : index
    %c0_150 = arith.constant 0 : index
    %c0_151 = arith.constant 0 : index
    %174 = vector.load %arg20[%c0_148, %c6_149, %c0_150, %c0_151] : memref<1x8x16x64xf32, #tpu.memory_space<vmem>>, vector<1x1x16x64xf32>
    %175 = vector.shape_cast %174 : vector<1x1x16x64xf32> to vector<1x16x64xf32>
    %176 = vector.shape_cast %173 : vector<1x16x64xf32> to vector<1x1x16x64xf32>
    tpu.vector_store %arg20[%c0_148, %c6_149, %c0_150, %c0_151], %176 {strides = array<i32>} : memref<1x8x16x64xf32, #tpu.memory_space<vmem>>, vector<1x1x16x64xf32>,
    %c0_152 = arith.constant 0 : index
    %c7 = arith.constant 7 : index
    %c0_153 = arith.constant 0 : index
    %c0_154 = arith.constant 0 : index
    %177 = vector.load %arg19[%c0_152, %c7, %c0_153, %c0_154] : memref<1x8x16x64xf32, #tpu.memory_space<vmem>>, vector<1x1x16x64xf32>
    %178 = vector.shape_cast %177 : vector<1x1x16x64xf32> to vector<1x16x64xf32>
    %179 = arith.mulf %178, %173 : vector<1x16x64xf32>
    %c0_155 = arith.constant 0 : index
    %c7_156 = arith.constant 7 : index
    %c0_157 = arith.constant 0 : index
    %c0_158 = arith.constant 0 : index
    %180 = vector.load %arg20[%c0_155, %c7_156, %c0_157, %c0_158] : memref<1x8x16x64xf32, #tpu.memory_space<vmem>>, vector<1x1x16x64xf32>
    %181 = vector.shape_cast %180 : vector<1x1x16x64xf32> to vector<1x16x64xf32>
    %182 = arith.addf %179, %181 : vector<1x16x64xf32>
    %c0_159 = arith.constant 0 : index
    %c7_160 = arith.constant 7 : index
    %c0_161 = arith.constant 0 : index
    %c0_162 = arith.constant 0 : index
    %183 = vector.load %arg20[%c0_159, %c7_160, %c0_161, %c0_162] : memref<1x8x16x64xf32, #tpu.memory_space<vmem>>, vector<1x1x16x64xf32>
    %184 = vector.shape_cast %183 : vector<1x1x16x64xf32> to vector<1x16x64xf32>
    %185 = vector.shape_cast %182 : vector<1x16x64xf32> to vector<1x1x16x64xf32>
    tpu.vector_store %arg20[%c0_159, %c7_160, %c0_161, %c0_162], %185 {strides = array<i32>} : memref<1x8x16x64xf32, #tpu.memory_space<vmem>>, vector<1x1x16x64xf32>,
    %186 = vector.shape_cast %100 : vector<1x8x16xf32> to vector<1x8x16x1xf32>
    %c0_163 = arith.constant 0 : index
    %c0_164 = arith.constant 0 : index
    %c0_165 = arith.constant 0 : index
    %c0_166 = arith.constant 0 : index
    %187 = vector.load %arg20[%c0_163, %c0_164, %c0_165, %c0_166] : memref<1x8x16x64xf32, #tpu.memory_space<vmem>>, vector<1x8x16x64xf32>
    %188 = vector.broadcast %186 : vector<1x8x16x1xf32> to vector<1x8x16x64xf32>
    %189 = arith.mulf %188, %187 : vector<1x8x16x64xf32>
    %cst_167 = arith.constant dense<0.000000e+00> : vector<1x8x64xf32>
    %190 = vector.multi_reduction <add>, %189, %cst_167 [2] : vector<1x8x16x64xf32> to vector<1x8x64xf32>
    %c0_168 = arith.constant 0 : index
    %191 = arith.index_cast %92 : i32 to index
    %c0_169 = arith.constant 0 : index
    %192 = vector.load %arg18[%c0_168, %191, %c0_169] : memref<1x8x64xf32, #tpu.memory_space<vmem>>, vector<1x8x64xf32>
    tpu.vector_store %arg18[%c0_168, %191, %c0_169], %190 {strides = array<i32>} : memref<1x8x64xf32, #tpu.memory_space<vmem>>, vector<1x8x64xf32>,
    %c1_i32_170 = arith.constant 1 : i32
    %c0_171 = arith.constant 0 : index
    %c0_172 = arith.constant 0 : index
    %c0_173 = arith.constant 0 : index
    %193 = vector.load %arg14[%c0_171, %c0_172, %c0_173] : memref<1x8x64xf32, #tpu.memory_space<vmem>>, vector<1x8x64xf32>
    %194 = vector.shape_cast %193 : vector<1x8x64xf32> to vector<8x64xf32>
    %c0_174 = arith.constant 0 : index
    %c0_175 = arith.constant 0 : index
    %c0_176 = arith.constant 0 : index
    %195 = vector.load %arg18[%c0_174, %c0_175, %c0_176] : memref<1x8x64xf32, #tpu.memory_space<vmem>>, vector<1x8x64xf32>
    %196 = vector.shape_cast %195 : vector<1x8x64xf32> to vector<8x64xf32>
    %c0_177 = arith.constant 0 : index
    %c0_178 = arith.constant 0 : index
    %c0_179 = arith.constant 0 : index
    %197 = vector.load %arg10[%c0_177, %c0_178, %c0_179] : memref<1x1x64xf32, #tpu.memory_space<vmem>>, vector<1x1x64xf32>
    %198 = vector.shape_cast %197 : vector<1x1x64xf32> to vector<1x64xf32>
    %199 = vector.broadcast %198 : vector<1x64xf32> to vector<8x64xf32>
    %200 = arith.mulf %194, %199 : vector<8x64xf32>
    %201 = arith.addf %196, %200 : vector<8x64xf32>
    %c0_180 = arith.constant 0 : index
    %c0_181 = arith.constant 0 : index
    %c0_182 = arith.constant 0 : index
    %202 = vector.load %arg13[%c0_180, %c0_181, %c0_182] : memref<1x8x32xf32, #tpu.memory_space<vmem>>, vector<1x8x32xf32>
    %203 = vector.shape_cast %202 : vector<1x8x32xf32> to vector<8x32xf32>
    %204 = arith.truncf %203 : vector<8x32xf32> to vector<8x32xbf16>
    %c0_183 = arith.constant 0 : index
    %c0_184 = arith.constant 0 : index
    %c0_185 = arith.constant 0 : index
    %205 = vector.load %arg4[%c0_183, %c0_184, %c0_185] : memref<1x32x64xbf16, #tpu.memory_space<vmem>>, vector<1x32x64xbf16>
    %206 = vector.shape_cast %205 : vector<1x32x64xbf16> to vector<32x64xbf16>
    %cst_186 = arith.constant dense<0.000000e+00> : vector<8x64xf32>
    %207 = tpu.matmul %204, %206, %cst_186 {dimension_numbers = #tpu.dot_dimension_numbers<[1], [0], [0], [1], [0, 0, 1, 1], [], []>} : vector<8x32xbf16>, vector<32x64xbf16>, vector<8x64xf32> -> vector<8x64xf32>
    %cst_187 = arith.constant 5.000000e-01 : f32
    %208 = vector.broadcast %cst_187 : f32 to vector<8x64xf32>
    %209 = arith.mulf %208, %207 : vector<8x64xf32>
    %210 = math.tanh %209 : vector<8x64xf32>
    %cst_188 = arith.constant 1.000000e+00 : f32
    %211 = vector.broadcast %cst_188 : f32 to vector<8x64xf32>
    %212 = arith.addf %211, %210 : vector<8x64xf32>
    %cst_189 = arith.constant 5.000000e-01 : f32
    %213 = vector.broadcast %cst_189 : f32 to vector<8x64xf32>
    %214 = arith.mulf %213, %212 : vector<8x64xf32>
    %215 = arith.mulf %207, %214 : vector<8x64xf32>
    %216 = arith.mulf %201, %215 : vector<8x64xf32>
    %217 = arith.truncf %216 : vector<8x64xf32> to vector<8x64xbf16>
    %c0_190 = arith.constant 0 : index
    %c0_191 = arith.constant 0 : index
    %c0_192 = arith.constant 0 : index
    %218 = vector.load %arg12[%c0_190, %c0_191, %c0_192] : memref<1x64x32xbf16, #tpu.memory_space<vmem>>, vector<1x64x32xbf16>
    %219 = vector.shape_cast %218 : vector<1x64x32xbf16> to vector<64x32xbf16>
    %cst_193 = arith.constant dense<0.000000e+00> : vector<8x32xf32>
    %220 = tpu.matmul %217, %219, %cst_193 {dimension_numbers = #tpu.dot_dimension_numbers<[1], [0], [0], [1], [0, 0, 1, 1], [], []>} : vector<8x64xbf16>, vector<64x32xbf16>, vector<8x32xf32> -> vector<8x32xf32>
    %221 = vector.shape_cast %220 : vector<8x32xf32> to vector<1x8x32xf32>
    %c0_194 = arith.constant 0 : index
    %c0_195 = arith.constant 0 : index
    %c0_196 = arith.constant 0 : index
    %222 = vector.load %arg13[%c0_194, %c0_195, %c0_196] : memref<1x8x32xf32, #tpu.memory_space<vmem>>, vector<1x8x32xf32>
    tpu.vector_store %arg13[%c0_194, %c0_195, %c0_196], %221 {strides = array<i32>} : memref<1x8x32xf32, #tpu.memory_space<vmem>>, vector<1x8x32xf32>,
    return
  }
  func.func @transform_0(%arg0: i32, %arg1: i32) -> (i32, i32, i32) {
    %c0_i32 = arith.constant 0 : i32
    %c0_i32_0 = arith.constant 0 : i32
    %c0_i32_1 = arith.constant 0 : i32
    return %arg0, %c0_i32, %c0_i32_0 : i32, i32, i32
  }
  func.func @transform_1(%arg0: i32, %arg1: i32) -> (i32, i32, i32) {
    %c0_i32 = arith.constant 0 : i32
    %c0_i32_0 = arith.constant 0 : i32
    %c0_i32_1 = arith.constant 0 : i32
    return %arg1, %c0_i32, %c0_i32_0 : i32, i32, i32
  }
  func.func @transform_2(%arg0: i32, %arg1: i32) -> (i32, i32, i32) {
    %c0_i32 = arith.constant 0 : i32
    %c0_i32_0 = arith.constant 0 : i32
    %c0_i32_1 = arith.constant 0 : i32
    return %arg1, %c0_i32, %c0_i32_0 : i32, i32, i32
  }
  func.func @transform_3(%arg0: i32, %arg1: i32) -> (i32, i32, i32) {
    %c0_i32 = arith.constant 0 : i32
    %c0_i32_0 = arith.constant 0 : i32
    %c0_i32_1 = arith.constant 0 : i32
    return %arg1, %c0_i32, %c0_i32_0 : i32, i32, i32
  }
  func.func @transform_4(%arg0: i32, %arg1: i32) -> (i32, i32, i32) {
    %c0_i32 = arith.constant 0 : i32
    %c0_i32_0 = arith.constant 0 : i32
    %c0_i32_1 = arith.constant 0 : i32
    return %arg1, %c0_i32, %c0_i32_0 : i32, i32, i32
  }
  func.func @transform_5(%arg0: i32, %arg1: i32) -> (i32, i32, i32) {
    %c0_i32 = arith.constant 0 : i32
    %c0_i32_0 = arith.constant 0 : i32
    %c0_i32_1 = arith.constant 0 : i32
    return %arg1, %c0_i32, %c0_i32_0 : i32, i32, i32
  }
  func.func @transform_6(%arg0: i32, %arg1: i32) -> (i32, i32, i32) {
    %c0_i32 = arith.constant 0 : i32
    %c0_i32_0 = arith.constant 0 : i32
    %c0_i32_1 = arith.constant 0 : i32
    return %arg1, %c0_i32, %c0_i32_0 : i32, i32, i32
  }
  func.func @transform_7(%arg0: i32, %arg1: i32) -> (i32, i32, i32) {
    %c0_i32 = arith.constant 0 : i32
    %c0_i32_0 = arith.constant 0 : i32
    %c0_i32_1 = arith.constant 0 : i32
    return %arg1, %c0_i32, %c0_i32_0 : i32, i32, i32
  }
  func.func @transform_8(%arg0: i32, %arg1: i32) -> (i32, i32, i32) {
    %c0_i32 = arith.constant 0 : i32
    %c0_i32_0 = arith.constant 0 : i32
    %c0_i32_1 = arith.constant 0 : i32
    return %arg1, %c0_i32, %c0_i32_0 : i32, i32, i32
  }
  func.func @transform_9(%arg0: i32, %arg1: i32) -> (i32, i32, i32) {
    %c0_i32 = arith.constant 0 : i32
    %c0_i32_0 = arith.constant 0 : i32
    %c0_i32_1 = arith.constant 0 : i32
    return %arg1, %c0_i32, %c0_i32_0 : i32, i32, i32
  }
  func.func @transform_10(%arg0: i32, %arg1: i32) -> (i32, i32, i32) {
    %c0_i32 = arith.constant 0 : i32
    %c0_i32_0 = arith.constant 0 : i32
    %c0_i32_1 = arith.constant 0 : i32
    return %arg1, %c0_i32, %c0_i32_0 : i32, i32, i32
  }
  func.func @transform_11(%arg0: i32, %arg1: i32) -> (i32, i32, i32) {
    %c0_i32 = arith.constant 0 : i32
    %c0_i32_0 = arith.constant 0 : i32
    %c0_i32_1 = arith.constant 0 : i32
    return %arg0, %c0_i32, %c0_i32_0 : i32, i32, i32
  }
}

</mosaic_0001>

<bundles_post_ra>
// kernel: tpu_custom_call.1
= control target key start
LH: loop header
LB: loop body
LE: loop exit
PB: predicated region body
PF: predicated region fallthrough
CT: control target
= control target key end

     0   :  { %s3351_s0 = inlined_call_operand.hbm [shape: f32[2,8,32], index: 0, kind: input, shape index: {}]   ;;  %s3352_s1 = inlined_call_operand.vmem [shape: bf16[8,32,64], index: 1, kind: input, shape index: {}]   ;;  %s3353_s2 = inlined_call_operand.vmem [shape: bf16[8,32,64], index: 2, kind: input, shape index: {}]   ;;  %s3354_s3 = inlined_call_operand.vmem [shape: f32[8,4,64], index: 3, kind: input, shape index: {}]   ;;  %s3355_s4 = inlined_call_operand.hbm [shape: f32[8,1,64], index: 4, kind: input, shape index: {}]   ;;  %s3356_s5 = inlined_call_operand.vmem [shape: f32[8,64,64], index: 5, kind: input, shape index: {}]   ;;  %s3357_s6 = inlined_call_operand.hbm [shape: f32[8,1,64], index: 6, kind: input, shape index: {}]   ;;  %s3358_s7 = inlined_call_operand.vmem [shape: f32[8,16,64], index: 7, kind: input, shape index: {}]   ;;  %s3359_s8 = inlined_call_operand.hbm [shape: f32[8,1,64], index: 8, kind: input, shape index: {}]   ;;  %s3360_s9 = inlined_call_operand.vmem [shape: f32[8,64,32], index: 9, kind: input, shape index: {}]   ;;  %s3361_s10 = inlined_call_operand.vmem [shape: bf16[8,64,32], index: 10, kind: input, shape index: {}]   ;;  %s3362_s11 = inlined_call_operand.hbm [shape: f32[2,8,32], index: 11, kind: output, shape index: {}]  }
   0x1   :  { %3384 = sst [smem:[#allocation35_spill]] %s3351_s0 }
   0x2   :  { %3385 = sst [smem:[#allocation36_spill]] %s3352_s1 }
   0x3   :  { %3386 = sst [smem:[#allocation37_spill]] %s3353_s2 }
   0x4   :  { %3387 = sst [smem:[#allocation38_spill]] %s3354_s3 }
   0x5   :  { %3388 = sst [smem:[#allocation39_spill]] %s3355_s4 }
   0x6   :  { %3389 = sst [smem:[#allocation40_spill]] %s3356_s5 }
   0x7   :  { %3390 = sst [smem:[#allocation41_spill]] %s3357_s6 }
   0x8   :  { %3391 = sst [smem:[#allocation42_spill]] %s3358_s7 }
   0x9   :  { %3392 = sst [smem:[#allocation43_spill]] %s3359_s8 }
   0xa   :  { %3393 = sst [smem:[#allocation44_spill]] %s3360_s9 }
   0xb   :  { %3394 = sst [smem:[#allocation45_spill]] %s3361_s10 }
   0xc   :  { %3395 = sst [smem:[#allocation46_spill]] %s3362_s11 }
   0xd   :  { %16 = vsyncpa [#allocation10], 0 }
   0xe   :  { %18 = vsyncpa [#allocation10 + $0x1], 0 }
   0xf   :  { %19 = vsyncpa [#allocation13], 0 }
  0x10   :  { %21 = vsyncpa [#allocation13 + $0x1], 0 }
  0x11   :  { %22 = vsyncpa [#allocation16], 0 }
  0x12   :  { %24 = vsyncpa [#allocation16 + $0x1], 0 }
  0x13   :  { %25 = vsyncpa [#allocation11], 0 }
  0x14   :  { %27 = vsyncpa [#allocation11 + $0x1], 0  ;;  %s2669_s17 = smov 0   ;;  %s2671_s18 = smov 0  }
  0x15   :  { %s2673_s19 = smov 0   ;;  %s2675_s20 = smov 0  }
  0x16   :  { %s2677_s21 = smov 0   ;;  %s2679_s22 = smov 0  }
  0x17   :  { %s2681_s23 = smov 0   ;;  %s2683_s24 = smov 0  }
  0x18   :  { %s2685_s25 = smov 0   ;;  %s2687_s26 = smov 0  }
  0x19   :  { %s2689_s27 = smov 0  }
  0x1a LB: > { %3396 = sst [smem:[#allocation22_spill]] %s2562_s18  ;;  %s2723_s28 = sadd.s32 4294967295, %s2598_s27   ;;  %s2598_s27 = sphi %s2689_s27, %s33_s27   ;;  %s2594_s26 = sphi %s2687_s26, %s3460_s26   ;;  %s2590_s25 = sphi %s2685_s25, %s3459_s25   ;;  %s2586_s24 = sphi %s2683_s24, %s3458_s24   ;;  %s2582_s23 = sphi %s2681_s23, %s3457_s23   ;;  %s2578_s22 = sphi %s2679_s22, %s3456_s22   ;;  %s2574_s21 = sphi %s2677_s21, %s3455_s21   ;;  %s2570_s20 = sphi %s2675_s20, %s3454_s20   ;;  %s2566_s19 = sphi %s2673_s19, %s3453_s19   ;;  %s2562_s18 = sphi %s2671_s18, %s3452_s18   ;;  %s2558_s17 = sphi %s2669_s17, %s3451_s17  }
  0x1b   : > { %3397 = sst [smem:[#allocation23_spill]] %s2566_s19  ;;  %s42_s29 = sadd.s32 1, %s2590_s25 }
  0x1c   : > { %3398 = sst [smem:[#allocation24_spill]] %s2570_s20  ;;  %p2726_p0 = scmp.ge.s32.totalorder %s42_s29, 8 }
  0x1d   : > { %3399 = sst [smem:[#allocation25_spill]] %s2574_s21  ;;  %p3369_p1 = scmp.eq.s32.totalorder %s2598_s27, 0 }
  0x1e   : > { %3400 = sst [smem:[#allocation26_spill]] %s2578_s22  ;;  %p3368_p2 = scmp.eq.s32.totalorder %s2723_s28, 0 }
  0x1f   : > { %3401 = sst [smem:[#allocation27_spill]] %s2582_s23  ;;  %s156_s12 = sadd.s32 1, %s2566_s19 }
  0x20   : > { %3402 = sst [smem:[#allocation28_spill]] %s2586_s24  ;;  %s3462_s29 = smov (%p2726_p0, %s42_s29), 0 }
  0x21   : > { %3403 = sst [smem:[#allocation29_spill]] %s2590_s25  ;;  %p163_p3 = scmp.ne.s32.totalorder %s2566_s19, %s2562_s18 }
  0x22   : > { %3404 = sst [smem:[#allocation30_spill]] %s2594_s26  ;;  %p169_p4 = scmp.ne.s32.totalorder %s2562_s18, %s2558_s17 }
  0x23   : > { %s3405_s30 = scalar_select %p2726_p0, 1, 0 }
  0x24   : > { %3406 = sst [smem:[#allocation31_spill]] %s3462_s29  ;;  %s153_s13 = ssub.s32 %s2590_s25, %s3462_s29 }
  0x25   : > { %p154_p5 = scmp.eq.s32.totalorder %s153_s13, 0  ;;  %p165_p6 = por %p163_p3, %p3369_p1 }
  0x26   : > { %p2746_p7 = por %p169_p4, %p3368_p2  ;;  %p3367_p8 = scmp.lt.s32.totalorder %s2598_s27, 16 }
  0x27   : > { %s2752_s15 = scalar_select %p154_p5, %s2566_s19, %s156_s12  }
  0x28   : > { %s3407_s14 = scalar_select %p2746_p7, 1, 0 }
  0x29   : > { %3408 = sst [smem:[#allocation32_spill]] %s2752_s15  ;;  %s416_s16 = sand.u32 1, %s2598_s27  }
  0x2a   : > { %s2756_s11 = sand.u32 1, %s2566_s19   ;;  %s2759_s24 = sshll.u32 %s2590_s25, 4 }
  0x2b   : > { %s419_s17 = scalar_lea.vmem [#allocation12], %s2756_s11  ;;  %s3409_s4 = sld [smem:[#allocation39_spill]] }
  0x2c   : > { %s426_s29 = sshll.u32 %s419_s17, 4  ;;  %p2772_p9 = pnand %p3367_p8, %p165_p6  ;;  %s2768_s29 = int_to_ptr.vmem [resolvable:$true] %s426_s29 }
  0x2d   : > { %s2778_s17 = scalar_lea.sflag [#allocation13], %s416_s16 }
  0x2e   : > { %s3410_s12 = scalar_select %p2772_p9, 1, 0 }
  0x2f   : > { %p2784_p13 = pneg %p2772_p9 }
  0x31   : > { %s2766_s9 = scalar_lea.hbm %s3409_s4, %s2759_s24  ;;  %s2353_s19 = scalar_lea.hbm %s3409_s4, 128 }
  0x32   : > { %s2348_s25 = scalar_lea.hbm %s2766_s9, 16  ;;  %p2354_p5 = scmp.lt.u32.totalorder %s2766_s9, %s3409_s4 }
  0x33   : > { %p2349_p12 = scmp.ne.s32.totalorder %s2766_s9, %s2348_s25  ;;  %p2355_p6 = scmp.lt.u32.totalorder %s2353_s19, %s2348_s25 }
  0x34   : > { %p2357_p2 = scmp.lt.u32.totalorder %s2348_s25, %s2766_s9 }
  0x35   : > { %p2351_p3 = pnand %p2784_p13, %p2349_p12  ;;  %p2356_p8 = por %p2355_p6, %p2354_p5 }
  0x37   : > { %p2352_p4 = pneg %p2351_p3  ;;  %p2358_p1 = por %p2357_p2, %p2356_p8 }
  0x39   : > { %p2359_p10 = pnand %p2358_p1, %p2352_p4 }
  0x3b   : > { %2362 = shalt.err (!%p2359_p10)
}
  0x3c   : > { %s2363_s16 = scalar_lea.vmem %s2768_s29, 16  ;;  %s2600_s15 = smov [#allocation12]  }
  0x3d   : > { %p2364_p12 = scmp.ne.s32.totalorder %s2768_s29, %s2363_s16  ;;  %s2368_s13 = sshll.u32 %s2600_s15, 4  ;;  %s2369_s13 = int_to_ptr.vmem [resolvable:$false] %s2368_s13 }
  0x3e   : > { %s2370_s5 = scalar_lea.vmem %s2369_s13, 32  ;;  %p2371_p7 = scmp.lt.s32.totalorder %s2768_s29, %s2369_s13 }
  0x3f   : > { %p2366_p3 = pnand %p2364_p12, %p2784_p13  ;;  %p2372_p0 = scmp.lt.s32.totalorder %s2370_s5, %s2363_s16 }
  0x41   : > { %p2367_p11 = pneg %p2366_p3  ;;  %p2373_p5 = por %p2372_p0, %p2371_p7 }
  0x43   : > { %p2374_p6 = pnand %p2373_p5, %p2367_p11 }
  0x45   : > { %2377 = shalt.err (!%p2374_p6)
}
  0x46   : > { %2194 = dma.hbm_to_vmem [thread:$0]  (!%p2772_p9), %s2766_s9, 16, %s2768_s29, %s2778_s17  }
  0x47   : > { %p3412_p0 = scmp.lt.s32.totalorder %s2598_s27, 17  ;;  %p3413_p1 = scmp.ge.s32.totalorder %s2598_s27, 1 }
  0x48   : > { %s2004_s19 = sadd.s32 4294967294, %s2598_s27   ;;  %s45_s25 = sadd.s32 1, %s2594_s26 }
  0x49   : > { %p2812_p2 = pnand %p3413_p1, %p3412_p0  ;;  %s52_s16 = sadd.s32 1, %s2578_s22 }
  0x4a   : > { %p3415_p7 = scmp.ne.s32.totalorder %s3405_s30, 0  ;;  %p59_p8 = scmp.ne.s32.totalorder %s2578_s22, %s2574_s21 }
  0x4b   : > { %s3414_s7 = scalar_select %p2812_p2, 1, 0 }
  0x4c   : > { %s3464_s25 = smov (!%p3415_p7, %s45_s25), %s2594_s26  ;;  %p65_p10 = scmp.ne.s32.totalorder %s2574_s21, %s2570_s20 }
  0x4d   : > { %p47_p11 = scmp.ge.s32.totalorder %s3464_s25, 2  ;;  %p349_p4 = scmp.eq.s32.totalorder %s2723_s28, 15 }
  0x4e   : > { %p3416_p12 = scmp.eq.s32.totalorder %s2598_s27, 0  ;;  %p3418_p5 = scmp.eq.s32.totalorder %s2723_s28, 0 }
  0x4f   : > { %s3466_s25 = smov (%p47_p11, %s3464_s25), 0  ;;  %p2841_p0 = por %p349_p4, %p59_p8 }
  0x50   : > { %p2829_p3 = por %p3416_p12, %p59_p8  ;;  %p2835_p6 = por %p3418_p5, %p65_p10 }
  0x51   : > { %3420 = sst [smem:[#allocation33_spill]] %s3466_s25  ;;  %p355_p1 = scmp.eq.s32.totalorder %s2004_s19, 15 }
  0x52   : > { %s3419_s29 = scalar_select %p2835_p6, 1, 0 }
  0x53   : > { %s3421_s30 = scalar_select %p2841_p0, 1, 0 }
  0x54   : > { %s49_s15 = ssub.s32 %s2594_s26, %s3466_s25  ;;  %s375_s13 = sand.u32 1, %s2578_s22  }
  0x55   : > { %p50_p7 = scmp.eq.s32.totalorder %s49_s15, 0  ;;  %p2848_p12 = por %p355_p1, %p65_p10 }
  0x56   : > { %s2007_s4 = sshll.u32 %s375_s13, 3  ;;  %s2008_s3 = sshll.u32 %s2594_s26, 7 }
  0x57   : > { %s3422_s5 = scalar_select %p2848_p12, 1, 0 }
  0x58   : > { %s2853_s20 = scalar_select %p50_p7, %s2578_s22, %s52_s16  }
  0x59   : > { %s3424_s0 = sld [smem:[#allocation35_spill]]  ;;  %s379_s19 = scalar_lea.vmem [#allocation9], %s2007_s4 }
  0x5a   : > { %3423 = sst [smem:[#allocation34_spill]] %s2853_s20  ;;  %s386_s25 = sshll.u32 %s379_s19, 4  ;;  %s2861_s25 = int_to_ptr.vmem [resolvable:$true] %s386_s25 }
  0x5b   : > { %p3425_p8 = scmp.lt.s32.totalorder %s2598_s27, 16  ;;  %s3427_s6 = sld [smem:[#allocation41_spill]] }
  0x5c   : > { %s444_s2 = scalar_lea.vmem [#allocation14], %s2756_s11  ;;  %s376_s4 = scalar_lea.sflag [#allocation10], %s375_s13 }
  0x5d   : > { %p2867_p10 = pnand %p3425_p8, %p2829_p3 }
  0x5f   : > { %s2859_s23 = scalar_lea.hbm %s3424_s0, %s2008_s3  ;;  %s2878_s3 = sshll.u32 %s444_s2, 4  ;;  %s452_s3 = int_to_ptr.vmem [resolvable:$true] %s2878_s3 }
  0x60   : > { %s2378_s19 = scalar_lea.hbm %s2859_s23, 128  ;;  %p2380_p4 = pneg %p2867_p10 }
  0x61   : > { %s2875_s1 = scalar_lea.hbm %s3427_s6, %s2759_s24  ;;  %p2379_p11 = scmp.ne.s32.totalorder %s2859_s23, %s2378_s19 }
  0x62   : > { %s2383_s26 = scalar_lea.hbm %s3424_s0, 256  ;;  %p2384_p1 = scmp.lt.u32.totalorder %s2859_s23, %s3424_s0 }
  0x63   : > { %p2381_p3 = pnand %p2380_p4, %p2379_p11  ;;  %p2385_p7 = scmp.lt.u32.totalorder %s2383_s26, %s2378_s19 }
  0x64   : > { %p2387_p12 = scmp.lt.u32.totalorder %s2378_s19, %s2859_s23 }
  0x65   : > { %p2382_p5 = pneg %p2381_p3  ;;  %p2386_p8 = por %p2385_p7, %p2384_p1 }
  0x67   : > { %p2388_p0 = por %p2387_p12, %p2386_p8 }
  0x69   : > { %p2389_p6 = pnand %p2388_p0, %p2382_p5 }
  0x6b   : > { %2392 = shalt.err (!%p2389_p6)
}
  0x6c   : > { %s2393_s13 = scalar_lea.vmem %s2861_s25, 128  ;;  %s2601_s20 = smov [#allocation9]  }
  0x6d   : > { %p2394_p11 = scmp.ne.s32.totalorder %s2861_s25, %s2393_s13  ;;  %s2398_s2 = sshll.u32 %s2601_s20, 4  ;;  %s2399_s2 = int_to_ptr.vmem [resolvable:$false] %s2398_s2 }
  0x6e   : > { %s2400_s22 = scalar_lea.vmem %s2399_s2, 256  ;;  %p2401_p9 = scmp.lt.s32.totalorder %s2861_s25, %s2399_s2 }
  0x6f   : > { %p2396_p3 = pnand %p2394_p11, %p2380_p4  ;;  %p2402_p1 = scmp.lt.s32.totalorder %s2400_s22, %s2393_s13 }
  0x71   : > { %p2397_p2 = pneg %p2396_p3  ;;  %p2403_p7 = por %p2402_p1, %p2401_p9 }
  0x73   : > { %p2404_p12 = pnand %p2403_p7, %p2397_p2 }
  0x75   : > { %2407 = shalt.err (!%p2404_p12)
}
  0x76   : > { %2191 = dma.hbm_to_vmem [thread:$0]  (!%p2867_p10), %s2859_s23, 128, %s2861_s25, %s376_s4  }
  0x77   : > { %s2408_s19 = scalar_lea.hbm %s2875_s1, 16  ;;  %s2413_s16 = scalar_lea.hbm %s3427_s6, 128 }
  0x78   : > { %p2409_p6 = scmp.ne.s32.totalorder %s2875_s1, %s2408_s19  ;;  %p2414_p9 = scmp.lt.u32.totalorder %s2875_s1, %s3427_s6 }
  0x79   : > { %p2415_p2 = scmp.lt.u32.totalorder %s2413_s16, %s2408_s19  ;;  %p2417_p8 = scmp.lt.u32.totalorder %s2408_s19, %s2875_s1 }
  0x7a   : > { %p2411_p0 = pnand %p2409_p6, %p2784_p13 }
  0x7b   : > { %p2416_p5 = por %p2415_p2, %p2414_p9 }
  0x7c   : > { %p2412_p4 = pneg %p2411_p0 }
  0x7d   : > { %p2418_p11 = por %p2417_p8, %p2416_p5 }
  0x7f   : > { %p2419_p3 = pnand %p2418_p11, %p2412_p4 }
  0x81   : > { %2422 = shalt.err (!%p2419_p3)
}
  0x82   : > { %s2423_s23 = scalar_lea.vmem %s452_s3, 16  ;;  %s2602_s25 = smov [#allocation14]  }
  0x83   : > { %p2424_p10 = scmp.ne.s32.totalorder %s452_s3, %s2423_s23  ;;  %s2428_s4 = sshll.u32 %s2602_s25, 4  ;;  %s2429_s4 = int_to_ptr.vmem [resolvable:$false] %s2428_s4 }
  0x84   : > { %s2430_s20 = scalar_lea.vmem %s2429_s4, 32  ;;  %p2431_p12 = scmp.lt.s32.totalorder %s452_s3, %s2429_s4 }
  0x85   : > { %p2426_p1 = pnand %p2424_p10, %p2784_p13  ;;  %p2432_p6 = scmp.lt.s32.totalorder %s2430_s20, %s2423_s23 }
  0x87   : > { %p2427_p7 = pneg %p2426_p1  ;;  %p2433_p0 = por %p2432_p6, %p2431_p12 }
  0x89   : > { %p2434_p2 = pnand %p2433_p0, %p2427_p7 }
  0x8b   : > { %2437 = shalt.err (!%p2434_p2)
}
  0x8c   : > { %p3428_p9 = scmp.ne.s32.totalorder %s3410_s12, 0  ;;  %s3429_s8 = sld [smem:[#allocation43_spill]] }
  0x8d   : > { %s469_s9 = scalar_lea.vmem [#allocation15], %s2756_s11  ;;  %s467_s16 = scalar_lea.sflag [#allocation16], %s2756_s11 }
  0x8e   : > { %2197 = dma.hbm_to_vmem [thread:$0]  (!%p3428_p9), %s2875_s1, 16, %s452_s3, %s2778_s17  }
  0x8f   : > { %s476_s26 = sshll.u32 %s469_s9, 4  ;;  %s477_s26 = int_to_ptr.vmem [resolvable:$true] %s476_s26 }
  0x92   : > { %s2928_s19 = scalar_lea.hbm %s3429_s8, %s2759_s24  ;;  %s2443_s1 = scalar_lea.hbm %s3429_s8, 128 }
  0x93   : > { %s2438_s15 = scalar_lea.hbm %s2928_s19, 16  ;;  %p2444_p11 = scmp.lt.u32.totalorder %s2928_s19, %s3429_s8 }
  0x94   : > { %p2439_p4 = scmp.ne.s32.totalorder %s2928_s19, %s2438_s15  ;;  %p2445_p3 = scmp.lt.u32.totalorder %s2443_s1, %s2438_s15 }
  0x95   : > { %p2447_p1 = scmp.lt.u32.totalorder %s2438_s15, %s2928_s19 }
  0x96   : > { %p2441_p5 = pnand %p2439_p4, %p2784_p13  ;;  %p2446_p10 = por %p2445_p3, %p2444_p11 }
  0x98   : > { %p2442_p8 = pneg %p2441_p5  ;;  %p2448_p7 = por %p2447_p1, %p2446_p10 }
  0x9a   : > { %p2449_p12 = pnand %p2448_p7, %p2442_p8 }
  0x9c   : > { %2452 = shalt.err (!%p2449_p12)
}
  0x9d   : > { %s2453_s11 = scalar_lea.vmem %s477_s26, 16  ;;  %s2603_s23 = smov [#allocation15]  }
  0x9e   : > { %p2454_p6 = scmp.ne.s32.totalorder %s477_s26, %s2453_s11  ;;  %s2458_s25 = sshll.u32 %s2603_s23, 4  ;;  %s2459_s25 = int_to_ptr.vmem [resolvable:$false] %s2458_s25 }
  0x9f   : > { %s2460_s4 = scalar_lea.vmem %s2459_s25, 32  ;;  %p2461_p4 = scmp.lt.s32.totalorder %s477_s26, %s2459_s25 }
  0xa0   : > { %p2456_p0 = pnand %p2454_p6, %p2784_p13  ;;  %p2462_p5 = scmp.lt.s32.totalorder %s2460_s4, %s2453_s11 }
  0xa2   : > { %p2457_p2 = pneg %p2456_p0  ;;  %p2463_p9 = por %p2462_p5, %p2461_p4 }
  0xa4   : > { %p2464_p3 = pnand %p2463_p9, %p2457_p2 }
  0xa6   : > { %2467 = shalt.err (!%p2464_p3)
}
  0xa7   : > { %p3430_p11 = scmp.ne.s32.totalorder %s3410_s12, 0  ;;  %p3431_p8 = scmp.ne.s32.totalorder %s3414_s7, 0 }
  0xa8   : > { %s2952_s10 = sand.u32 (!%p3431_p8), 1, %s2574_s21   ;;  %p3432_p13 = scmp.ne.s32.totalorder (!%p3431_p8), %s3419_s29, 0 }
  0xa9   : > { %2200 = dma.hbm_to_vmem [thread:$0]  (!%p3430_p11), %s2928_s19, 16, %s477_s26, %s467_s16  }
  0xaa   : > { %501 = sbr.rel (%p3431_p8) target bundleno = 1111 (0x457), region = 64  ;;  %s3381_s20 = sshll.u32 (!%p3431_p8), %s2952_s10, 3 }
  0xab   : > { %s504_s2 = scalar_lea.sflag (!%p3431_p8), [#allocation10], %s2952_s10  ;;  %s507_s22 = scalar_lea.vmem (!%p3431_p8), [#allocation9], %s3381_s20 }
  0xb1   : > { %2541 = dma.done.wait (%p3432_p13), %s504_s2, 128  }
  0xb2   : > { %2543 = vsyncadd (%p3432_p13), %s504_s2, 4294967168  ;;  %s512_s12 = sand.u32 1, %s2723_s28   ;;  %s2964_s7 = sand.u32 1, %s2562_s18  }
  0xb3   : > { %s513_s19 = scalar_lea.sflag [#allocation13], %s512_s12  ;;  %p3433_p9 = scmp.ne.s32.totalorder %s3407_s14, 0 }
  0xb5   : > { %2545 = dma.done.wait (%p3433_p9), %s513_s19, 32  }
  0xb6   : > { %2547 = vsyncadd (%p3433_p9), %s513_s19, 4294967264  ;;  %s529_s26 = scalar_lea.sflag [#allocation16], %s2964_s7 }
  0xb7   : > { %2549 = dma.done.wait (%p3433_p9), %s529_s26, 16  }
  0xb8   : > { %2551 = vsyncadd (%p3433_p9), %s529_s26, 4294967280  ;;  %s3434_s28 = sld [smem:[#allocation27_spill]]  ;;  %s3435_s24 = sld [smem:[#allocation36_spill]] }
  0xb9   : > { %s3436_s4 = sld [smem:[#allocation37_spill]]  ;;  %s3437_s14 = sld [smem:[#allocation38_spill]] }
  0xba   : > { %s3438_s20 = sld [smem:[#allocation40_spill]]  ;;  %s3439_s1 = sld [smem:[#allocation42_spill]] }
  0xbb   : > { %s3440_s25 = sld [smem:[#allocation44_spill]]  ;;  %s3441_s19 = sld [smem:[#allocation45_spill]] }
  0xbc   : > { %s3442_s18 = sshll.u32 %s2952_s10, 3 }
  0xbd   : > { %s3015_s9 = scalar_lea.vmem [#allocation17], %s3442_s18 }
  0xbe   : > { %p616_p10 = scmp.lt.s32.totalorder %s3434_s28, 7  ;;  %p2028_p1 = scmp.ne.s32.totalorder %s3434_s28, 0 }
  0xbf   : > { %v655_v0 = vld [vmem:[%s507_s22] sm:$0xff] (!%p2028_p1)  ;;  %vm656_vm0 = vcmask (!%p2028_p1), 261120  }
  0xc0   : > { %s617_s15 = scalar_select %p616_p10, %s3434_s28, 7 }
  0xc1   : > { %654 = sbr.rel (%p2028_p1) target bundleno = 200 (0xc8), region = 84  ;;  %657 = vst.msk [vmem:[%s3015_s9] sm:$0xff] (!%p2028_p1), %vm656_vm0, %v655_v0 }
  0xc2   : > { %s2053_s13 = sshll.u32 %s617_s15, 4  ;;  %s2019_s17 = sshll.u32 %s617_s15, 2 }
  0xc3   : > { %s620_s11 = scalar_lea.vmem %s3435_s24, %s2053_s13  ;;  %s2986_s2 = scalar_lea.vmem %s3436_s4, %s2053_s13 }
  0xc4   : > { %s2991_s26 = scalar_lea.vmem %s3437_s14, %s2019_s17  ;;  %s2055_s16 = sshll.u32 %s617_s15, 6 }
  0xc5   : > { %s2996_s0 = scalar_lea.vmem %s3438_s20, %s2055_s16  ;;  %s3001_s3 = scalar_lea.vmem %s3439_s1, %s2053_s13 }
  0xc6   : > { %s3006_s4 = scalar_lea.vmem %s3440_s25, %s2055_s16  ;;  %s2058_s21 = sshll.u32 %s617_s15, 5 }
  0xc7   : > { %s3011_s14 = scalar_lea.vmem %s3441_s19, %s2058_s21 }
  0xc8 PF: > { %v2299_v1 = vld [vmem:[%s620_s11] sm:$0xff]   ;;  %v2604_v2 = vmov 0.0   ;;  %v2300_v3 = vld [vmem:[%s620_s11 + $0x8] sm:$0xff]   ;;  %vm2605_vm1 = vmmov 0   ;;  %vm676_vm2 = vcmask 261120   ;;  %v775_v11 = vld [vmem:[%s2996_s0 + $0x10] sm:$0xff]  ;;  %v720_v31 = vlaneseq }
  0xc9   : > { %2088 = vmatprep.subr.bf16.mxu1 %v2604_v2  ;;  %2092 = vmatprep.mubr.msk.bf16.mxu1 %vm2605_vm1, %v2604_v2  ;;  %v658_v4 = vld [vmem:[%s3015_s9] sm:$0xff]  ;;  %v2606_v13 = vmov 0.0|0.0   ;;  %v877_v15 = vld [vmem:[%s3006_s4 + $0x10] sm:$0xff]  ;;  %vm771_vm6 = vcmask 523264   ;;  %s3444_s6 = scalar_lea.vmem [#allocation14], %s2964_s7  ;;  %vm1596_vm9 = vcmask 1041409  }
  0xca   : > { %2089 = vmatpush3.bf16.msra.mxu1 %v2299_v1  ;;  %2131 = vmatprep.mubr.msk.f32.mxu0 %vm2605_vm1, %v2604_v2  ;;  %v3026_v5 = vpack.c.bf16 %v658_v4, %v658_v4  ;;  %v773_v6 = vld [vmem:[%s2996_s0] sm:$0xff]  ;;  %v774_v7 = vld [vmem:[%s2996_s0 + $0x8] sm:$0xff]  ;;  %v776_v12 = vld [vmem:[%s2996_s0 + $0x18] sm:$0xff]  ;;  %v3050_v32 = vshrl.u32 %v720_v31, 7  ;;  %vm1598_vm10 = vcmask 1042434   ;;  %vm1600_vm11 = vcmask 1043459  }
  0xcb   : > { %2090 = vmatprep.subr.bf16.mxu1 %v2604_v2  ;;  %v875_v8 = vld [vmem:[%s3006_s4] sm:$0xff]  ;;  %v2155_v9 = vpack.c.bf16 %v774_v7, %v773_v6  ;;  %v876_v10 = vld [vmem:[%s3006_s4 + $0x8] sm:$0xff]  ;;  %2166 = vmatprep.subr.bf16.mxu0 %v2606_v13  ;;  %v878_v16 = vld [vmem:[%s3006_s4 + $0x18] sm:$0xff]  ;;  %v2158_v17 = vpack.c.bf16 %v776_v12, %v775_v11  ;;  %vm1602_vm12 = vcmask 1044484   ;;  %vm1604_vm13 = vcmask 1045509   ;;  %s3445_s8 = sld [smem:[#allocation28_spill]] }
  0xcc   : > { %v2167_v14 = vpack.c.bf16 %v876_v10, %v875_v8  ;;  %v2170_v18 = vpack.c.bf16 %v878_v16, %v877_v15  ;;  %v777_v19 = vld [vmem:[%s2996_s0 + $0x20] sm:$0xff]  ;;  %v778_v20 = vld [vmem:[%s2996_s0 + $0x28] sm:$0xff]  ;;  %v779_v25 = vld [vmem:[%s2996_s0 + $0x30] sm:$0xff]  ;;  %vm730_vm3 = vcmp.ge.s32.totalorder %v3050_v32, 3  ;;  %vm740_vm4 = vcmp.ge.s32.totalorder %v3050_v32, 2  ;;  %s3446_s18 = scalar_lea.vmem [#allocation15], %s2964_s7 }
  0xcd   : > { %v879_v21 = vld [vmem:[%s3006_s4 + $0x20] sm:$0xff]  ;;  %v880_v22 = vld [vmem:[%s3006_s4 + $0x28] sm:$0xff]  ;;  %v2161_v23 = vpack.c.bf16 %v778_v20, %v777_v19  ;;  %v780_v26 = vld [vmem:[%s2996_s0 + $0x38] sm:$0xff]  ;;  %vm750_vm5 = vcmp.ge.s32.totalorder %v3050_v32, 1  ;;  %s3443_s0 = scalar_lea.vmem [#allocation12], %s2964_s7  ;;  %v3082_v8 = vsub.s32 0, %v3050_v32 }
  0xce   : > { %2091 = vmatpush3.bf16.msra.mxu1 %v2300_v3  ;;  %2168 = vmatpush3.bf16.msra.mxu0 %v2167_v14  ;;  %v2173_v24 = vpack.c.bf16 %v880_v22, %v879_v21  ;;  %v881_v27 = vld [vmem:[%s3006_s4 + $0x30] sm:$0xff]  ;;  %v882_v28 = vld [vmem:[%s3006_s4 + $0x38] sm:$0xff]  ;;  %v2164_v29 = vpack.c.bf16 %v780_v26, %v779_v25  ;;  %v2032_v34 = vld [vmem:[%s2991_s26 + $0x3] ss:$0 sm:$0xff]  ;;  %v1129_v10 = vsub.s32 1, %v3050_v32  ;;  %v1151_v16 = vsub.s32 3, %v3050_v32 }
  0xcf   : > { %2154 = vmatprep.subr.bf16.mxu1 %v2606_v13  ;;  %2169 = vmatprep.subr.bf16.mxu0 %v2606_v13  ;;  %v2176_v30 = vpack.c.bf16 %v882_v28, %v881_v27  ;;  %v2033_v35 = vld [vmem:[%s2991_s26] ss:$0 sm:$0xff]  ;;  %v2034_v42 = vld [vmem:[%s2991_s26 + $0x1] ss:$0 sm:$0xff]  ;;  %v2035_v47 = vld [vmem:[%s2991_s26 + $0x2] ss:$0 sm:$0xff] }
  0xd0   : > { %v2036_v53 = vld [vmem:[%s3443_s0] ss:$0 sm:$0xff]  ;;  %v2302_v62 = vld [vmem:[%s2986_s2 + $0x8] sm:$0xff]   ;;  %v1162_v19 = vsub.s32 4, %v3050_v32  ;;  %v1173_v22 = vsub.s32 5, %v3050_v32  ;;  %v1184_v26 = vsub.s32 6, %v3050_v32 }
  0xd1   : > { %2093 = vmatmul.mubr.msk.bf16.vlgmr.msra.gmra.mrb[0].mxu1 %vm676_vm2, %v3026_v5  ;;  %v2301_v60 = vld [vmem:[%s2986_s2] sm:$0xff]   ;;  %vm1606_vm14 = vcmask 1046534   ;;  %vm1608_vm15 = vcmask 1047559   ;;  %s2050_s21 = sshll.u32 %s3445_s8, 7  ;;  %s1781_s20 = sshll.u32 %s3015_s9, 4  ;;  %s3288_s20 = int_to_ptr.vmem [resolvable:$true] %s1781_s20 }
  0xd2   : > { %2112 = vmatprep.mubr.msk.f32.mxu1 %vm2605_vm1, %v2604_v2  ;;  %2156 = vmatpush3.bf16.msra.mxu1 %v2155_v9  ;;  %v2037_v63 = vld [vmem:[%s3444_s6] ss:$0 sm:$0xff]  ;;  %s3447_s16 = sld [smem:[#allocation46_spill]]  ;;  %s1768_s7 = scalar_lea.sflag [#allocation11], %s2952_s10 }
  0xd3   : > { %2157 = vmatprep.subr.bf16.mxu1 %v2606_v13  ;;  %2171 = vmatpush3.bf16.msra.mxu0 %v2170_v18  ;;  %s2468_s15 = scalar_lea.vmem %s3288_s20, 128  ;;  %p3448_p12 = scmp.ne.s32.totalorder %s3421_s30, 0 }
  0xd4   : > { %2172 = vmatprep.subr.bf16.mxu0 %v2606_v13  ;;  %p2469_p7 = scmp.ne.s32.totalorder %s3288_s20, %s2468_s15  ;;  %s2608_s13 = smov [#allocation17]  }
  0xd5   : > { %s2472_s11 = sshll.u32 %s2608_s13, 4  ;;  %s2473_s11 = int_to_ptr.vmem [resolvable:$false] %s2472_s11 }
  0xd6   : > { %2159 = vmatpush3.bf16.msra.mxu1 %v2158_v17  ;;  %p2470_p6 = pnand %p2469_p7, %p3448_p12  ;;  %s2474_s2 = scalar_lea.vmem %s2473_s11, 256 }
  0xd7   : > { %2160 = vmatprep.subr.bf16.mxu1 %v2606_v13  ;;  %2174 = vmatpush3.bf16.msra.mxu0 %v2173_v24  ;;  %p2475_p2 = scmp.lt.s32.totalorder %s3288_s20, %s2473_s11  ;;  %p2476_p4 = scmp.lt.s32.totalorder %s2474_s2, %s2468_s15 }
  0xd8   : > { %2175 = vmatprep.subr.bf16.mxu0 %v2606_v13  ;;  %s3286_s28 = scalar_lea.hbm %s3447_s16, %s2050_s21  ;;  %p2471_p0 = pneg %p2470_p6 }
  0xd9   : > { %p2477_p5 = por %p2476_p4, %p2475_p2 }
  0xda   : > { %2162 = vmatpush3.bf16.msra.mxu1 %v2161_v23 }
  0xdb   : > { %2163 = vmatprep.subr.bf16.mxu1 %v2606_v13  ;;  %2177 = vmatpush3.bf16.msra.mxu0 %v2176_v30  ;;  %v1140_v13 = vsub.s32 2, %v3050_v32  ;;  %v2607_v30 = vmov 1966171168   ;;  %p2478_p3 = pnand %p2477_p5, %p2471_p0 }
  0xdc   : > { %2142 = vmatprep.subr.bf16.mxu0 %v2604_v2  ;;  %v965_v31 = vunpack.c.l.s4 %v2607_v30 }
  0xde   : > { %2165 = vmatpush3.bf16.msra.mxu1 %v2164_v29 }
  0xdf   : > { %2134 = vmatprep.subr.bf16.mxu1 %v2604_v2 }
 0x1a4   : > { %v714_v33 = vpop.f32.mrb[0].mxu1 }
 0x1a5   : > { %v729_v36 = vrot.slane %v714_v33, 5  ;;  %v739_v37 = vrot.slane %v714_v33, 6  ;;  %v749_v38 = vrot.slane %v714_v33, 7  ;;  %v2094_v39 = vpop.f32.mrb[1].mxu1  ;;  %v727_v45 = vmul.f32 %v2032_v34, %v714_v33 }
 0x1a6   : > { %v717_v40 = vpop.f32.mrb[2].mxu1 }
 0x1a7   : > { %v731_v41 = vsel %vm730_vm3, %v729_v36, 0.0  ;;  %v741_v43 = vsel %vm740_vm4, %v739_v37, 0.0  ;;  %v2095_v44 = vpop.f32.mrb[3].mxu1  ;;  %v751_v48 = vsel %vm750_vm5, %v749_v38, 0.0  ;;  %v966_v38 = vunpack.c.0.s8 %v965_v31 }
 0x1a8   : > { %v736_v46 = vmul.f32 %v2033_v35, %v731_v41  ;;  %v746_v50 = vmul.f32 %v2034_v42, %v741_v43  ;;  %v756_v52 = vmul.f32 %v2035_v47, %v751_v48  ;;  %v1195_v35 = vsub.s32 7, %v3050_v32 }
 0x1a9   : > { %v3122_v40 = vsub.s32 %v966_v38, %v3050_v32 }
 0x1aa   : > { %v737_v49 = vadd.f32 %v736_v46, %v727_v45 }
 0x1ac   : > { %v747_v51 = vadd.f32 %v746_v50, %v737_v49 }
 0x1ae   : > { %v757_v54 = vadd.f32 %v756_v52, %v747_v51  ;;  %v957_v51 = vld [vmem:[%s3001_s3] sm:$0xff] }
 0x1b0   : > { %v765_v55 = vadd.f32 %v2036_v53, %v757_v54  ;;  %v958_v54 = vld [vmem:[%s3001_s3 + $0x8] sm:$0xff] }
 0x1b2   : > { %v766_v56 = vmul.f32 0.5, %v765_v55 }
 0x1b4   : > { %2308 = vtanh.f32 %v766_v56 }
 0x1be   : > { %v2309_v57 = vpop.eup %2308 }
 0x1bf   : > { %v768_v58 = vadd.f32 1.0, %v2309_v57 }
 0x1c1   : > { %v769_v59 = vmul.f32 0.5, %v768_v58 }
 0x1c3   : > { %v3062_v61 = vmul.f32 %v769_v59, %v765_v55 }
 0x1c5   : > { %772 = vst.msk [vmem:[#allocation2] sm:$0xff] %vm771_vm6, %v3062_v61  ;;  %2113 = vmatmul.mubr.msk.f32.vlgmr.msra.gmra.mrb[4].mxu1 %vm771_vm6, %v3062_v61  ;;  %2132 = vmatmul.mubr.msk.f32.vlgmr.msra.gmra.mrb[0].mxu0 %vm771_vm6, %v3062_v61 }
 0x1c6   : > { %2135 = vmatpush3.bf16.msra.mxu1 %v2301_v60  ;;  %2138 = vmatprep.mubr.msk.bf16.mxu1 %vm2605_vm1, %v2604_v2 }
 0x1c7   : > { %2136 = vmatprep.subr.bf16.mxu1 %v2604_v2  ;;  %2150 = vmatprep.mubr.msk.bf16.mxu0 %vm2605_vm1, %v2604_v2 }
 0x1ca   : > { %2137 = vmatpush3.bf16.msra.mxu1 %v2302_v62 }
 0x1cd   : > { %2139 = vmatmul.mubr.msk.bf16.vlgmr.msra.gmra.mrb[8].mxu1 %vm676_vm2, %v3026_v5 }
 0x298   : > { %v857_v0 = vpop.f32.mrb[4].mxu1  ;;  %v949_v1 = vpop.f32.mrb[0].mxu0 }
 0x299   : > { %v858_v3 = vadd.f32 %v2037_v63, %v857_v0  ;;  %956 = vst.msk [vmem:[#allocation5] sm:$0xff] %vm676_vm2, %v949_v1  ;;  %v2114_v4 = vpop.f32.mrb[5].mxu1  ;;  %v2133_v6 = vpop.f32.mrb[1].mxu0 }
 0x29b   : > { %v862_v7 = vmin.f32 %v858_v3, 20.0  ;;  %vm861_vm8 = vcmp.gt.f32.partialorder %v858_v3, 20.0 }
 0x29d   : > { %v863_v9 = vmul.f32 1.442695, %v862_v7 }
 0x29f   : > { %2310 = vpow2.f32 %v863_v9 }
 0x2a0   : > { %v961_v11 = vld [vmem:[#allocation5] sm:$0xff] }
 0x2a1   : > { %v3085_v12 = vrot.slane %v961_v11, %v1129_v10  ;;  %v1119_v5 = vrot.slane %v961_v11, %v3082_v8  ;;  %v3091_v15 = vrot.slane %v961_v11, %v1140_v13  ;;  %v3096_v18 = vrot.slane %v961_v11, %v1151_v16 }
 0x2a2   : > { %v3101_v21 = vrot.slane %v961_v11, %v1162_v19  ;;  %v3106_v25 = vrot.slane %v961_v11, %v1173_v22  ;;  %v3111_v34 = vrot.slane %v961_v11, %v1184_v26  ;;  %v3119_v39 = vrot.slane %v961_v11, %v1195_v35 }
 0x2a3   : > { %1132 = vbcast.lane.b32.xlu1 %v3085_v12, 256  ;;  %1121 = vbcast.lane.b32.xlu0 %v1119_v5, 256 }
 0x2a7   : > { %1136 = vbcast.lane.b32.xlu1 %v3085_v12, 264  ;;  %1125 = vbcast.lane.b32.xlu0 %v1119_v5, 264 }
 0x2a9   : > { %v2311_v14 = vpop.eup %2310 }
 0x2aa   : > { %v865_v17 = vadd.f32 1.0, %v2311_v14  ;;  %v868_v20 = vmul.f32 -0.5, %v2311_v14  ;;  %v871_v24 = vand.u32 2147483647, %v2311_v14 }
 0x2ab   : > { %1147 = vbcast.lane.b32.xlu1 %v3091_v15, 264  ;;  %1143 = vbcast.lane.b32.xlu0 %v3091_v15, 256 }
 0x2ac   : > { %2312 = vlog2.f32 %v865_v17  ;;  %v869_v23 = vadd.f32 1.0, %v868_v20  ;;  %vm872_vm7 = vcmp.lt.f32.partialorder %v871_v24, 0.0004427343 }
 0x2ae   : > { %v870_v29 = vmul.f32 %v2311_v14, %v869_v23 }
 0x2af   : > { %1158 = vbcast.lane.b32.xlu1 %v3096_v18, 264  ;;  %1154 = vbcast.lane.b32.xlu0 %v3096_v18, 256 }
 0x2b3   : > { %1169 = vbcast.lane.b32.xlu1 %v3101_v21, 264  ;;  %1165 = vbcast.lane.b32.xlu0 %v3101_v21, 256 }
 0x2b6   : > { %v2313_v27 = vpop.eup %2312 }
 0x2b7   : > { %v867_v28 = vmul.f32 0.6931472, %v2313_v27  ;;  %1180 = vbcast.lane.b32.xlu1 %v3106_v25, 264  ;;  %1176 = vbcast.lane.b32.xlu0 %v3106_v25, 256 }
 0x2b9   : > { %v873_v33 = vsel %vm872_vm7, %v870_v29, %v867_v28 }
 0x2ba   : > { %v874_v36 = vsel %vm861_vm8, %v858_v3, %v873_v33 }
 0x2bb   : > { %953 = vst.msk [vmem:[#allocation3] sm:$0xff] %vm771_vm6, %v874_v36  ;;  %v954_v37 = vmul.f32 %v874_v36, %v3062_v61  ;;  %1191 = vbcast.lane.b32.xlu1 %v3111_v34, 264  ;;  %1187 = vbcast.lane.b32.xlu0 %v3111_v34, 256 }
 0x2bd   : > { %955 = vst.msk [vmem:[#allocation4] sm:$0xff] %vm771_vm6, %v954_v37 }
 0x2bf   : > { %1202 = vbcast.lane.b32.xlu1 %v3119_v39, 264  ;;  %1198 = vbcast.lane.b32.xlu0 %v3119_v39, 256 }
 0x2c2   : > { %v959_v41 = vld [vmem:[#allocation3] sm:$0xff] }
 0x2c3   : > { %v963_v42 = vcombine.high %v959_v41, %v959_v41  ;;  %v970_v43 = vrot.slane %v959_v41, %v3122_v40  ;;  %1426 = vbcast.lane.b32.xlu1 %v1119_v5, 280  ;;  %1422 = vbcast.lane.b32.xlu0 %v1119_v5, 272 }
 0x2c4   : > { %v960_v47 = vld [vmem:[#allocation4] sm:$0xff] }
 0x2c5   : > { %v977_v44 = vrot.slane %v963_v42, %v3122_v40  ;;  %v978_v45 = vcombine.high %v970_v43, %v970_v43  ;;  %v986_v46 = vrot.slane %v970_v43, %v3122_v40  ;;  %v1212_v53 = vrot.slane %v960_v47, %v3122_v40 }
 0x2c6   : > { %v1205_v58 = vcombine.high %v960_v47, %v960_v47 }
 0x2c7   : > { %v979_v32 = vcombine.high %v977_v44, %v977_v44  ;;  %v993_v48 = vrot.slane %v977_v44, %v3122_v40  ;;  %v1000_v49 = vrot.slane %v978_v45, %v3122_v40  ;;  %v1008_v50 = vcombine.high %v986_v46, %v986_v46  ;;  %1434 = vbcast.lane.b32.xlu1 %v3085_v12, 280 }
 0x2c8   : > { %v1015_v52 = vrot.slane %v986_v46, %v3082_v8  ;;  %1430 = vbcast.lane.b32.xlu0 %v3085_v12, 272  ;;  %v1220_v9 = vcombine.high %v1212_v53, %v1212_v53  ;;  %v1228_v10 = vrot.slane %v1212_v53, %v3122_v40  ;;  %v1219_v11 = vrot.slane %v1205_v58, %v3122_v40 }
 0x2c9   : > { %v1007_v55 = vrot.slane %v979_v32, %v3122_v40  ;;  %v1010_v56 = vcombine.high %v1000_v49, %v1000_v49  ;;  %v1019_v57 = vrot.slane %v1000_v49, %v3082_v8  ;;  %v1009_v59 = vcombine.high %v993_v48, %v993_v48 }
 0x2ca   : > { %v1023_v60 = vrot.slane %v1008_v50, %v3082_v8  ;;  %v1031_v63 = vrot.slane %v993_v48, %v3082_v8  ;;  %v1052_v0 = vmul.f32 %v1015_v52, %v957_v51  ;;  %v1053_v3 = vmul.f32 %v1015_v52, %v958_v54 }
 0x2cb   : > { %v1011_v61 = vcombine.high %v1007_v55, %v1007_v55  ;;  %v1027_v62 = vrot.slane %v1010_v56, %v3082_v8  ;;  %1442 = vbcast.lane.b32.xlu1 %v3091_v15, 280  ;;  %v1035_v1 = vrot.slane %v1007_v55, %v3082_v8  ;;  %v1054_v4 = vmul.f32 %v1019_v57, %v957_v51 }
 0x2cc   : > { %v1055_v6 = vmul.f32 %v1019_v57, %v958_v54  ;;  %1438 = vbcast.lane.b32.xlu0 %v3091_v15, 272  ;;  %v1056_v7 = vmul.f32 %v1023_v60, %v957_v51  ;;  %v1039_v12 = vrot.slane %v1009_v59, %v3082_v8  ;;  %v1057_v13 = vmul.f32 %v1023_v60, %v958_v54 }
 0x2cd   : > { %v1043_v5 = vrot.slane %v1011_v61, %v3082_v8  ;;  %v1058_v14 = vmul.f32 %v1027_v62, %v957_v51  ;;  %v1059_v16 = vmul.f32 %v1027_v62, %v958_v54  ;;  %v1060_v17 = vmul.f32 %v1031_v63, %v957_v51 }
 0x2ce   : > { %v1061_v19 = vmul.f32 %v1031_v63, %v958_v54  ;;  %v1068_v20 = vmul.f32 1.442695, %v1052_v0  ;;  %v1062_v22 = vmul.f32 %v1035_v1, %v957_v51  ;;  %v1070_v15 = vmul.f32 1.442695, %v1053_v3 }
 0x2cf   : > { %1450 = vbcast.lane.b32.xlu1 %v3096_v18, 280  ;;  %v1072_v23 = vmul.f32 1.442695, %v1054_v4  ;;  %v1074_v24 = vmul.f32 1.442695, %v1055_v6  ;;  %v1063_v26 = vmul.f32 %v1035_v1, %v958_v54  ;;  %v1242_v28 = vrot.slane %v1220_v9, %v3122_v40 }
 0x2d0   : > { %2314 = vpow2.f32 %v1068_v20  ;;  %v1076_v27 = vmul.f32 1.442695, %v1056_v7  ;;  %v1064_v29 = vmul.f32 %v1039_v12, %v957_v51  ;;  %v1065_v30 = vmul.f32 %v1039_v12, %v958_v54  ;;  %1446 = vbcast.lane.b32.xlu0 %v3096_v18, 272  ;;  %v3163_v18 = vpop.f32.mrb[8].mxu1 }
 0x2d1   : > { %2316 = vpow2.f32 %v1070_v15  ;;  %v1078_v31 = vmul.f32 1.442695, %v1057_v13  ;;  %v1066_v33 = vmul.f32 %v1043_v5, %v957_v51  ;;  %v1067_v35 = vmul.f32 %v1043_v5, %v958_v54  ;;  %v2140_v53 = vpop.f32.mrb[9].mxu1 }
 0x2d2   : > { %2318 = vpow2.f32 %v1072_v23  ;;  %v1080_v36 = vmul.f32 1.442695, %v1058_v14  ;;  %v1082_v37 = vmul.f32 1.442695, %v1059_v16  ;;  %v1084_v38 = vmul.f32 1.442695, %v1060_v17 }
 0x2d3   : > { %2320 = vpow2.f32 %v1074_v24  ;;  %v1086_v41 = vmul.f32 1.442695, %v1061_v19  ;;  %1458 = vbcast.lane.b32.xlu1 %v3101_v21, 280  ;;  %v3154_v42 = vrot.slane %v1242_v28, %v3082_v8  ;;  %v3157_v43 = vrot.slane %v1228_v10, %v3082_v8  ;;  %v1681_v56 = vpop.f32.mrb[10].mxu1  ;;  %v2304_v14 = vld [vmem:[%s3011_s14] sm:$0xff]   ;;  %v2306_v16 = vld [vmem:[%s3011_s14 + $0x10] sm:$0xff]  }
 0x2d4   : > { %2322 = vpow2.f32 %v1076_v27  ;;  %v1250_v44 = vcombine.high %v1228_v10, %v1228_v10  ;;  %v1252_v45 = vcombine.high %v1242_v28, %v1242_v28  ;;  %v1235_v46 = vrot.slane %v1219_v11, %v3122_v40  ;;  %1454 = vbcast.lane.b32.xlu0 %v3101_v21, 272  ;;  %v2141_v60 = vpop.f32.mrb[11].mxu1  ;;  %2143 = vmatpush3.bf16.msra.mxu0 %v2304_v14  ;;  %v2307_v17 = vld [vmem:[%s3011_s14 + $0x18] sm:$0xff]  }
 0x2d5   : > { %2324 = vpow2.f32 %v1078_v31  ;;  %v1221_v47 = vcombine.high %v1219_v11, %v1219_v11  ;;  %v1088_v32 = vmul.f32 1.442695, %v1062_v22  ;;  %v1090_v48 = vmul.f32 1.442695, %v1063_v26  ;;  %2144 = vmatprep.subr.bf16.mxu0 %v2604_v2 }
 0x2d6   : > { %2326 = vpow2.f32 %v1080_v36  ;;  %v3161_v49 = vrot.slane %v1250_v44, %v3082_v8  ;;  %v3166_v50 = vrot.slane %v1252_v45, %v3082_v8  ;;  %v3169_v51 = vrot.slane %v1235_v46, %v3082_v8 }
 0x2d7   : > { %2328 = vpow2.f32 %v1082_v37  ;;  %v1249_v52 = vrot.slane %v1221_v47, %v3122_v40  ;;  %v1092_v54 = vmul.f32 1.442695, %v1064_v29  ;;  %1466 = vbcast.lane.b32.xlu1 %v3106_v25, 280  ;;  %v1251_v55 = vcombine.high %v1235_v46, %v1235_v46 }
 0x2d8   : > { %2330 = vpow2.f32 %v1084_v38  ;;  %v1094_v57 = vmul.f32 1.442695, %v1065_v30  ;;  %v1096_v62 = vmul.f32 1.442695, %v1066_v33  ;;  %v1098_v21 = vmul.f32 1.442695, %v1067_v35 }
 0x2d9   : > { %2332 = vpow2.f32 %v1086_v41  ;;  %v3175_v58 = vrot.slane %v1249_v52, %v3082_v8  ;;  %v1253_v59 = vcombine.high %v1249_v52, %v1249_v52  ;;  %v3178_v40 = vrot.slane %v1251_v55, %v3082_v8  ;;  %1462 = vbcast.lane.b32.xlu0 %v3106_v25, 272 }
 0x2da   : > { %v2315_v61 = vpop.eup %2314  ;;  %2334 = vpow2.f32 %v1088_v32 }
 0x2db   : > { %v2317_v63 = vpop.eup %2316  ;;  %2336 = vpow2.f32 %v1090_v48  ;;  %1100 = vst.msk [vmem:[#allocation7] sm:$0xff] %vm771_vm6, %v2315_v61  ;;  %v3182_v0 = vrot.slane %v1253_v59, %v3082_v8  ;;  %1474 = vbcast.lane.b32.xlu1 %v3111_v34, 280 }
 0x2dc   : > { %v2319_v1 = vpop.eup %2318  ;;  %2338 = vpow2.f32 %v1092_v54  ;;  %1101 = vst.msk [vmem:[#allocation7 + $0x8] sm:$0xff] %vm771_vm6, %v2317_v63 }
 0x2dd   : > { %v2321_v3 = vpop.eup %2320  ;;  %2340 = vpow2.f32 %v1094_v57  ;;  %1102 = vst.msk [vmem:[#allocation7 + $0x10] sm:$0xff] %vm771_vm6, %v2319_v1  ;;  %1470 = vbcast.lane.b32.xlu0 %v3111_v34, 272 }
 0x2de   : > { %v2323_v4 = vpop.eup %2322  ;;  %2342 = vpow2.f32 %v1096_v62  ;;  %1103 = vst.msk [vmem:[#allocation7 + $0x18] sm:$0xff] %vm771_vm6, %v2321_v3 }
 0x2df   : > { %v2325_v6 = vpop.eup %2324  ;;  %2344 = vpow2.f32 %v1098_v21  ;;  %1104 = vst.msk [vmem:[#allocation7 + $0x20] sm:$0xff] %vm771_vm6, %v2323_v4  ;;  %1482 = vbcast.lane.b32.xlu1 %v3119_v39, 280 }
 0x2e0   : > { %v2327_v8 = vpop.eup %2326  ;;  %1105 = vst.msk [vmem:[#allocation7 + $0x28] sm:$0xff] %vm771_vm6, %v2325_v6 }
 0x2e1   : > { %v2329_v25 = vpop.eup %2328  ;;  %1106 = vst.msk [vmem:[#allocation7 + $0x30] sm:$0xff] %vm771_vm6, %v2327_v8  ;;  %1478 = vbcast.lane.b32.xlu0 %v3119_v39, 272  ;;  %v2305_v39 = vld [vmem:[%s3011_s14 + $0x8] sm:$0xff]  }
 0x2e2   : > { %v2331_v7 = vpop.eup %2330  ;;  %1107 = vst.msk [vmem:[#allocation7 + $0x38] sm:$0xff] %vm771_vm6, %v2329_v25  ;;  %2145 = vmatpush3.bf16.msra.mxu0 %v2305_v39  ;;  %v1326_v28 = vld [vmem:[#allocation7] sm:$0xff] }
 0x2e3   : > { %v2333_v9 = vpop.eup %2332  ;;  %1108 = vst.msk [vmem:[#allocation7 + $0x40] sm:$0xff] %vm771_vm6, %v2331_v7  ;;  %2146 = vmatprep.subr.bf16.mxu0 %v2604_v2  ;;  %v1328_v30 = vmul.f32 0.0, %v1326_v28  ;;  %v1327_v36 = vld [vmem:[#allocation7 + $0x8] sm:$0xff] }
 0x2e4   : > { %v2335_v10 = vpop.eup %2334  ;;  %1109 = vst.msk [vmem:[#allocation7 + $0x48] sm:$0xff] %vm771_vm6, %v2333_v9  ;;  %v1337_v38 = vld [vmem:[#allocation7 + $0x10] sm:$0xff]  ;;  %v1329_v44 = vmul.f32 0.0, %v1327_v36 }
 0x2e5   : > { %v2337_v11 = vpop.eup %2336  ;;  %1110 = vst.msk [vmem:[#allocation7 + $0x50] sm:$0xff] %vm771_vm6, %v2335_v10  ;;  %v1338_v52 = vld [vmem:[#allocation7 + $0x18] sm:$0xff] }
 0x2e6   : > { %v2339_v34 = vpop.eup %2338  ;;  %1111 = vst.msk [vmem:[#allocation7 + $0x58] sm:$0xff] %vm771_vm6, %v2337_v11  ;;  %2147 = vmatpush3.bf16.msra.mxu0 %v2306_v16  ;;  %v1349_v53 = vld [vmem:[#allocation7 + $0x20] sm:$0xff] }
 0x2e7   : > { %v2341_v12 = vpop.eup %2340  ;;  %1112 = vst.msk [vmem:[#allocation7 + $0x60] sm:$0xff] %vm771_vm6, %v2339_v34  ;;  %2148 = vmatprep.subr.bf16.mxu0 %v2604_v2  ;;  %v1350_v21 = vld [vmem:[#allocation7 + $0x28] sm:$0xff] }
 0x2e8   : > { %v2343_v5 = vpop.eup %2342  ;;  %1113 = vst.msk [vmem:[#allocation7 + $0x68] sm:$0xff] %vm771_vm6, %v2341_v12  ;;  %v1361_v1 = vld [vmem:[#allocation7 + $0x30] sm:$0xff] }
 0x2e9   : > { %v2345_v13 = vpop.eup %2344  ;;  %1114 = vst.msk [vmem:[#allocation7 + $0x70] sm:$0xff] %vm771_vm6, %v2343_v5  ;;  %v1362_v34 = vld [vmem:[#allocation7 + $0x38] sm:$0xff] }
 0x2ea   : > { %1115 = vst.msk [vmem:[#allocation7 + $0x78] sm:$0xff] %vm771_vm6, %v2345_v13  ;;  %2149 = vmatpush3.bf16.msra.mxu0 %v2307_v17  ;;  %v1373_v12 = vld [vmem:[#allocation7 + $0x40] sm:$0xff] }
 0x2ee   : > { %v1397_v36 = vld [vmem:[#allocation7 + $0x60] sm:$0xff] }
 0x315   : > { %v1133_v19 = vpop.permute.xlu1 %1132  ;;  %v1122_v20 = vpop.permute.xlu0 %1121 }
 0x316   : > { %v1296_v22 = vmul.f32 %v3154_v42, %v1133_v19  ;;  %v1294_v15 = vmul.f32 %v3157_v43, %v1122_v20 }
 0x318   : > { %1312 = vst.msk [vmem:[#allocation8 + $0x10] sm:$0xff] %vm771_vm6, %v1296_v22  ;;  %1310 = vst.msk [vmem:[#allocation8] sm:$0xff] %vm771_vm6, %v1294_v15  ;;  %v1374_v15 = vld [vmem:[#allocation7 + $0x48] sm:$0xff] }
 0x319   : > { %v1137_v23 = vpop.permute.xlu1 %1136  ;;  %v1126_v24 = vpop.permute.xlu0 %1125 }
 0x31a   : > { %v1297_v26 = vmul.f32 %v3154_v42, %v1137_v23  ;;  %v1295_v27 = vmul.f32 %v3157_v43, %v1126_v24  ;;  %v1385_v23 = vld [vmem:[#allocation7 + $0x50] sm:$0xff] }
 0x31c   : > { %1313 = vst.msk [vmem:[#allocation8 + $0x18] sm:$0xff] %vm771_vm6, %v1297_v26  ;;  %1311 = vst.msk [vmem:[#allocation8 + $0x8] sm:$0xff] %vm771_vm6, %v1295_v27 }
 0x31d   : > { %v1148_v2 = vpop.permute.xlu1 %1147  ;;  %v1144_v29 = vpop.permute.xlu0 %1143 }
 0x31e   : > { %v1299_v31 = vmul.f32 %v3161_v49, %v1148_v2  ;;  %v1298_v33 = vmul.f32 %v3161_v49, %v1144_v29 }
 0x31f   : > { %v1330_v35 = vld [vmem:[#allocation8] sm:$0xff]  ;;  %v1342_v32 = vld [vmem:[#allocation8 + $0x10] sm:$0xff] }
 0x320   : > { %v1332_v37 = vadd.f32 %v1330_v35, %v1328_v30  ;;  %1315 = vst.msk [vmem:[#allocation8 + $0x28] sm:$0xff] %vm771_vm6, %v1299_v31  ;;  %1314 = vst.msk [vmem:[#allocation8 + $0x20] sm:$0xff] %vm771_vm6, %v1298_v33  ;;  %v1386_v35 = vld [vmem:[#allocation7 + $0x58] sm:$0xff] }
 0x321   : > { %v1159_v41 = vpop.permute.xlu1 %1158  ;;  %v1155_v42 = vpop.permute.xlu0 %1154 }
 0x322   : > { %1334 = vst.msk [vmem:[#allocation8] sm:$0xff] %vm771_vm6, %v1332_v37  ;;  %v1339_v43 = vmul.f32 %v1337_v38, %v1332_v37  ;;  %v1301_v45 = vmul.f32 %v3166_v50, %v1159_v41  ;;  %v1300_v46 = vmul.f32 %v3166_v50, %v1155_v42 }
 0x323   : > { %v1331_v47 = vld [vmem:[#allocation8 + $0x8] sm:$0xff]  ;;  %v1343_v60 = vld [vmem:[#allocation8 + $0x18] sm:$0xff] }
 0x324   : > { %v1333_v48 = vadd.f32 %v1331_v47, %v1329_v44  ;;  %v1344_v49 = vadd.f32 %v1342_v32, %v1339_v43  ;;  %1317 = vst.msk [vmem:[#allocation8 + $0x38] sm:$0xff] %vm771_vm6, %v1301_v45  ;;  %1316 = vst.msk [vmem:[#allocation8 + $0x30] sm:$0xff] %vm771_vm6, %v1300_v46  ;;  %v1398_v46 = vld [vmem:[#allocation7 + $0x68] sm:$0xff]  ;;  %v1409_v47 = vld [vmem:[#allocation7 + $0x70] sm:$0xff] }
 0x325   : > { %v1170_v54 = vpop.permute.xlu1 %1169  ;;  %v1166_v55 = vpop.permute.xlu0 %1165 }
 0x326   : > { %1335 = vst.msk [vmem:[#allocation8 + $0x8] sm:$0xff] %vm771_vm6, %v1333_v48  ;;  %v1340_v56 = vmul.f32 %v1338_v52, %v1333_v48  ;;  %1346 = vst.msk [vmem:[#allocation8 + $0x10] sm:$0xff] %vm771_vm6, %v1344_v49  ;;  %v1351_v57 = vmul.f32 %v1349_v53, %v1344_v49  ;;  %v1303_v50 = vmul.f32 %v3169_v51, %v1170_v54 }
 0x327   : > { %v1302_v59 = vmul.f32 %v3169_v51, %v1166_v55  ;;  %v1354_v61 = vld [vmem:[#allocation8 + $0x20] sm:$0xff]  ;;  %v1355_v7 = vld [vmem:[#allocation8 + $0x28] sm:$0xff] }
 0x328   : > { %v1345_v62 = vadd.f32 %v1343_v60, %v1340_v56  ;;  %v1356_v63 = vadd.f32 %v1354_v61, %v1351_v57  ;;  %1319 = vst.msk [vmem:[#allocation8 + $0x48] sm:$0xff] %vm771_vm6, %v1303_v50  ;;  %v1410_v57 = vld [vmem:[#allocation7 + $0x78] sm:$0xff] }
 0x329   : > { %1318 = vst.msk [vmem:[#allocation8 + $0x40] sm:$0xff] %vm771_vm6, %v1302_v59  ;;  %v1181_v3 = vpop.permute.xlu1 %1180  ;;  %v1177_v4 = vpop.permute.xlu0 %1176 }
 0x32a   : > { %1347 = vst.msk [vmem:[#allocation8 + $0x18] sm:$0xff] %vm771_vm6, %v1345_v62  ;;  %v1352_v6 = vmul.f32 %v1350_v21, %v1345_v62  ;;  %1358 = vst.msk [vmem:[#allocation8 + $0x20] sm:$0xff] %vm771_vm6, %v1356_v63  ;;  %v1363_v8 = vmul.f32 %v1361_v1, %v1356_v63  ;;  %v1305_v51 = vmul.f32 %v3175_v58, %v1181_v3 }
 0x32b   : > { %v1304_v25 = vmul.f32 %v3175_v58, %v1177_v4  ;;  %v1366_v9 = vld [vmem:[#allocation8 + $0x30] sm:$0xff]  ;;  %v1367_v17 = vld [vmem:[#allocation8 + $0x38] sm:$0xff] }
 0x32c   : > { %v1357_v10 = vadd.f32 %v1355_v7, %v1352_v6  ;;  %v1368_v11 = vadd.f32 %v1366_v9, %v1363_v8  ;;  %1321 = vst.msk [vmem:[#allocation8 + $0x58] sm:$0xff] %vm771_vm6, %v1305_v51  ;;  %v1484_v51 = vld [vmem:[#allocation8] sm:$0xff] }
 0x32d   : > { %1320 = vst.msk [vmem:[#allocation8 + $0x50] sm:$0xff] %vm771_vm6, %v1304_v25  ;;  %v1192_v5 = vpop.permute.xlu1 %1191  ;;  %v1188_v13 = vpop.permute.xlu0 %1187  ;;  %v1486_v63 = vld [vmem:[#allocation8 + $0x10] sm:$0xff]  ;;  %v1485_v8 = vld [vmem:[#allocation8 + $0x8] sm:$0xff] }
 0x32e   : > { %1359 = vst.msk [vmem:[#allocation8 + $0x28] sm:$0xff] %vm771_vm6, %v1357_v10  ;;  %v1364_v14 = vmul.f32 %v1362_v34, %v1357_v10  ;;  %1370 = vst.msk [vmem:[#allocation8 + $0x30] sm:$0xff] %vm771_vm6, %v1368_v11  ;;  %v1375_v39 = vmul.f32 %v1373_v12, %v1368_v11  ;;  %v1307_v58 = vmul.f32 %v3178_v40, %v1192_v5 }
 0x32f   : > { %v1306_v16 = vmul.f32 %v3178_v40, %v1188_v13  ;;  %v1379_v29 = vld [vmem:[#allocation8 + $0x48] sm:$0xff] }
 0x330   : > { %v1378_v19 = vld [vmem:[#allocation8 + $0x40] sm:$0xff]  ;;  %v1369_v20 = vadd.f32 %v1367_v17, %v1364_v14  ;;  %1323 = vst.msk [vmem:[#allocation8 + $0x68] sm:$0xff] %vm771_vm6, %v1307_v58 }
 0x331   : > { %v1380_v22 = vadd.f32 %v1378_v19, %v1375_v39  ;;  %1322 = vst.msk [vmem:[#allocation8 + $0x60] sm:$0xff] %vm771_vm6, %v1306_v16  ;;  %v1203_v24 = vpop.permute.xlu1 %1202  ;;  %v1199_v26 = vpop.permute.xlu0 %1198  ;;  %v1487_v62 = vld [vmem:[#allocation8 + $0x18] sm:$0xff]  ;;  %v1488_v6 = vld [vmem:[#allocation8 + $0x20] sm:$0xff] }
 0x332   : > { %1371 = vst.msk [vmem:[#allocation8 + $0x38] sm:$0xff] %vm771_vm6, %v1369_v20  ;;  %v1376_v27 = vmul.f32 %v1374_v15, %v1369_v20  ;;  %v1309_v40 = vmul.f32 %v3182_v0, %v1203_v24  ;;  %v1308_v2 = vmul.f32 %v3182_v0, %v1199_v26 }
 0x333   : > { %1382 = vst.msk [vmem:[#allocation8 + $0x40] sm:$0xff] %vm771_vm6, %v1380_v22  ;;  %v1387_v28 = vmul.f32 %v1385_v23, %v1380_v22  ;;  %v1391_v43 = vld [vmem:[#allocation8 + $0x58] sm:$0xff] }
 0x334   : > { %v1390_v30 = vld [vmem:[#allocation8 + $0x50] sm:$0xff]  ;;  %v1381_v31 = vadd.f32 %v1379_v29, %v1376_v27  ;;  %1325 = vst.msk [vmem:[#allocation8 + $0x78] sm:$0xff] %vm771_vm6, %v1309_v40  ;;  %1324 = vst.msk [vmem:[#allocation8 + $0x70] sm:$0xff] %vm771_vm6, %v1308_v2 }
 0x335   : > { %v1392_v33 = vadd.f32 %v1390_v30, %v1387_v28  ;;  %v1427_v37 = vpop.permute.xlu1 %1426  ;;  %v1423_v38 = vpop.permute.xlu0 %1422  ;;  %v1489_v4 = vld [vmem:[#allocation8 + $0x28] sm:$0xff]  ;;  %v1490_v20 = vld [vmem:[#allocation8 + $0x30] sm:$0xff] }
 0x336   : > { %1383 = vst.msk [vmem:[#allocation8 + $0x48] sm:$0xff] %vm771_vm6, %v1381_v31  ;;  %v1388_v41 = vmul.f32 %v1386_v35, %v1381_v31  ;;  %v1501_v10 = vmul.f32 %v1485_v8, %v1427_v37  ;;  %v1500_v11 = vmul.f32 %v1484_v51, %v1423_v38 }
 0x337   : > { %1394 = vst.msk [vmem:[#allocation8 + $0x50] sm:$0xff] %vm771_vm6, %v1392_v33  ;;  %v1399_v42 = vmul.f32 %v1397_v36, %v1392_v33  ;;  %v1403_v53 = vld [vmem:[#allocation8 + $0x68] sm:$0xff] }
 0x338   : > { %v1402_v0 = vld [vmem:[#allocation8 + $0x60] sm:$0xff]  ;;  %v1393_v44 = vadd.f32 %v1391_v43, %v1388_v41  ;;  %v1517_v58 = vsel %vm771_vm6, %v1501_v10, 0.0  ;;  %v1516_v16 = vsel %vm771_vm6, %v1500_v11, 0.0 }
 0x339   : > { %v1404_v45 = vadd.f32 %v1402_v0, %v1399_v42  ;;  %v1435_v32 = vpop.permute.xlu1 %1434  ;;  %v1491_v34 = vld [vmem:[#allocation8 + $0x38] sm:$0xff]  ;;  %v1518_v28 = vadd.f32 %v1517_v58, %v1516_v16 }
 0x33a   : > { %1395 = vst.msk [vmem:[#allocation8 + $0x58] sm:$0xff] %vm771_vm6, %v1393_v44  ;;  %v1400_v48 = vmul.f32 %v1398_v46, %v1393_v44  ;;  %v1431_v52 = vpop.permute.xlu0 %1430  ;;  %v1503_v1 = vmul.f32 %v1487_v62, %v1435_v32  ;;  %v1492_v31 = vld [vmem:[#allocation8 + $0x40] sm:$0xff] }
 0x33b   : > { %1406 = vst.msk [vmem:[#allocation8 + $0x60] sm:$0xff] %vm771_vm6, %v1404_v45  ;;  %v1411_v49 = vmul.f32 %v1409_v47, %v1404_v45  ;;  %v1414_v54 = vld [vmem:[#allocation8 + $0x70] sm:$0xff]  ;;  %v1415_v61 = vld [vmem:[#allocation8 + $0x78] sm:$0xff]  ;;  %v1502_v3 = vmul.f32 %v1486_v63, %v1431_v52  ;;  %v1519_v42 = vrot.slane %v1518_v28, 4 }
 0x33c   : > { %v1405_v55 = vadd.f32 %v1403_v53, %v1400_v48  ;;  %v1526_v12 = vsel %vm771_vm6, %v1503_v1, 0.0 }
 0x33d   : > { %v1416_v56 = vadd.f32 %v1414_v54, %v1411_v49  ;;  %v1443_v50 = vpop.permute.xlu1 %1442  ;;  %v1525_v5 = vsel %vm771_vm6, %v1502_v3, 0.0  ;;  %v1493_v15 = vld [vmem:[#allocation8 + $0x48] sm:$0xff] }
 0x33e   : > { %1407 = vst.msk [vmem:[#allocation8 + $0x68] sm:$0xff] %vm771_vm6, %v1405_v55  ;;  %v1412_v59 = vmul.f32 %v1410_v57, %v1405_v55  ;;  %v1439_v60 = vpop.permute.xlu0 %1438  ;;  %v1505_v25 = vmul.f32 %v1489_v4, %v1443_v50  ;;  %v1527_v17 = vadd.f32 %v1526_v12, %v1525_v5  ;;  %v1494_v47 = vld [vmem:[#allocation8 + $0x50] sm:$0xff]  ;;  %v1520_v55 = vadd.f32 %v1519_v42, %v1518_v28 }
 0x33f   : > { %1418 = vst.msk [vmem:[#allocation8 + $0x70] sm:$0xff] %vm771_vm6, %v1416_v56  ;;  %v1504_v7 = vmul.f32 %v1488_v6, %v1439_v60 }
 0x340   : > { %v1417_v21 = vadd.f32 %v1415_v61, %v1412_v59  ;;  %v1535_v14 = vsel %vm771_vm6, %v1505_v25, 0.0  ;;  %v1528_v2 = vrot.slane %v1527_v17, 4  ;;  %v1521_v51 = vrot.slane %v1520_v55, 2 }
 0x341   : > { %v1451_v9 = vpop.permute.xlu1 %1450  ;;  %v1534_v39 = vsel %vm771_vm6, %v1504_v7, 0.0  ;;  %v1495_v35 = vld [vmem:[#allocation8 + $0x58] sm:$0xff] }
 0x342   : > { %1419 = vst.msk [vmem:[#allocation8 + $0x78] sm:$0xff] %vm771_vm6, %v1417_v21  ;;  %v1507_v13 = vmul.f32 %v1491_v34, %v1451_v9  ;;  %v1447_v19 = vpop.permute.xlu0 %1446  ;;  %v1536_v23 = vadd.f32 %v1535_v14, %v1534_v39  ;;  %v1529_v44 = vadd.f32 %v1528_v2, %v1527_v17  ;;  %v1496_v63 = vld [vmem:[#allocation8 + $0x60] sm:$0xff]  ;;  %v1684_v39 = vmul.f32 0.5, %v3163_v18 }
 0x343   : > { %v1506_v26 = vmul.f32 %v1490_v20, %v1447_v19  ;;  %v1522_v17 = vadd.f32 %v1521_v51, %v1520_v55 }
 0x344   : > { %v1544_v24 = vsel %vm771_vm6, %v1507_v13, 0.0  ;;  %v1537_v36 = vrot.slane %v1536_v23, 4  ;;  %v1530_v59 = vrot.slane %v1529_v44, 2  ;;  %2346 = vtanh.f32 %v1684_v39 }
 0x345   : > { %v1459_v22 = vpop.permute.xlu1 %1458  ;;  %v1543_v40 = vsel %vm771_vm6, %v1506_v26, 0.0  ;;  %v1497_v48 = vld [vmem:[#allocation8 + $0x68] sm:$0xff]  ;;  %v1523_v2 = vrot.slane %v1522_v17, 1 }
 0x346   : > { %v1509_v27 = vmul.f32 %v1493_v15, %v1459_v22  ;;  %v1545_v29 = vadd.f32 %v1544_v24, %v1543_v40  ;;  %v1455_v30 = vpop.permute.xlu0 %1454  ;;  %v1538_v49 = vadd.f32 %v1537_v36, %v1536_v23  ;;  %v1531_v11 = vadd.f32 %v1530_v59, %v1529_v44  ;;  %v1498_v13 = vld [vmem:[#allocation8 + $0x70] sm:$0xff] }
 0x347   : > { %v1508_v38 = vmul.f32 %v1492_v31, %v1455_v30  ;;  %v1524_v42 = vadd.f32 %v1523_v2, %v1522_v17 }
 0x348   : > { %v1553_v37 = vsel %vm771_vm6, %v1509_v27, 0.0  ;;  %v1546_v43 = vrot.slane %v1545_v29, 4  ;;  %v1539_v3 = vrot.slane %v1538_v49, 2  ;;  %v1532_v24 = vrot.slane %v1531_v11, 1 }
 0x349   : > { %v1467_v33 = vpop.permute.xlu1 %1466  ;;  %v1552_v0 = vsel %vm771_vm6, %v1508_v38, 0.0  ;;  %v1499_v1 = vld [vmem:[#allocation8 + $0x78] sm:$0xff] }
 0x34a   : > { %v1511_v41 = vmul.f32 %v1495_v35, %v1467_v33  ;;  %v1554_v45 = vadd.f32 %v1553_v37, %v1552_v0  ;;  %v1547_v56 = vadd.f32 %v1546_v43, %v1545_v29  ;;  %v1540_v14 = vadd.f32 %v1539_v3, %v1538_v49 }
 0x34b   : > { %v1463_v46 = vpop.permute.xlu0 %1462  ;;  %v1533_v35 = vadd.f32 %v1532_v24, %v1531_v11 }
 0x34c   : > { %v1562_v52 = vsel %vm771_vm6, %v1511_v41, 0.0  ;;  %v1510_v53 = vmul.f32 %v1494_v47, %v1463_v46  ;;  %v1555_v57 = vrot.slane %v1554_v45, 4  ;;  %v1548_v25 = vrot.slane %v1547_v56, 2 }
 0x34d   : > { %v1475_v32 = vpop.permute.xlu1 %1474  ;;  %v1541_v40 = vrot.slane %v1540_v14, 1  ;;  %v1597_v46 = vsel %vm1596_vm9, %v1533_v35, %v1524_v42 }
 0x34e   : > { %v1513_v54 = vmul.f32 %v1497_v48, %v1475_v32  ;;  %v1561_v50 = vsel %vm771_vm6, %v1510_v53, 0.0  ;;  %v1556_v60 = vadd.f32 %v1555_v57, %v1554_v45  ;;  %v1549_v19 = vadd.f32 %v1548_v25, %v1547_v56 }
 0x34f   : > { %v1563_v61 = vadd.f32 %v1562_v52, %v1561_v50  ;;  %v1471_v62 = vpop.permute.xlu0 %1470  ;;  %v1542_v41 = vadd.f32 %v1541_v40, %v1540_v14 }
 0x350   : > { %v1571_v4 = vsel %vm771_vm6, %v1513_v54, 0.0  ;;  %v1512_v6 = vmul.f32 %v1496_v63, %v1471_v62  ;;  %v1557_v9 = vrot.slane %v1556_v60, 2  ;;  %v1550_v29 = vrot.slane %v1549_v19, 1  ;;  %v2347_v54 = vpop.eup %2346  ;;  %v2040_v62 = vld [vmem:[%s3446_s18] ss:$0 sm:$0xff] }
 0x351   : > { %v1483_v21 = vpop.permute.xlu1 %1482  ;;  %v1564_v7 = vrot.slane %v1563_v61, 4  ;;  %v1599_v48 = vsel %vm1598_vm10, %v1542_v41, %v1597_v46 }
 0x352   : > { %v1515_v8 = vmul.f32 %v1499_v1, %v1483_v21  ;;  %v1570_v10 = vsel %vm771_vm6, %v1512_v6, 0.0  ;;  %v1558_v15 = vadd.f32 %v1557_v9, %v1556_v60  ;;  %v1551_v43 = vadd.f32 %v1550_v29, %v1549_v19 }
 0x353   : > { %v1565_v34 = vadd.f32 %v1564_v7, %v1563_v61  ;;  %v1572_v12 = vadd.f32 %v1571_v4, %v1570_v10  ;;  %v1479_v5 = vpop.permute.xlu0 %1478  ;;  %v1686_v60 = vadd.f32 1.0, %v2347_v54  ;;  %v1612_v61 = vld [vmem:[#allocation2] sm:$0xff] }
 0x354   : > { %v1580_v58 = vsel %vm771_vm6, %v1515_v8, 0.0  ;;  %v1514_v16 = vmul.f32 %v1498_v13, %v1479_v5  ;;  %v1559_v33 = vrot.slane %v1558_v15, 1  ;;  %v1601_v52 = vsel %vm1600_vm11, %v1551_v43, %v1599_v48 }
 0x355   : > { %v1566_v20 = vrot.slane %v1565_v34, 2  ;;  %v1573_v22 = vrot.slane %v1572_v12, 4  ;;  %v1687_v63 = vmul.f32 0.5, %v1686_v60  ;;  %v1621_v21 = vmul.f32 %v2040_v62, %v1612_v61 }
 0x356   : > { %v1579_v23 = vsel %vm771_vm6, %v1514_v16, 0.0  ;;  %v1560_v45 = vadd.f32 %v1559_v33, %v1558_v15 }
 0x357   : > { %v1567_v26 = vadd.f32 %v1566_v20, %v1565_v34  ;;  %v1574_v27 = vadd.f32 %v1573_v22, %v1572_v12  ;;  %v1581_v28 = vadd.f32 %v1580_v58, %v1579_v23  ;;  %v1688_v3 = vmul.f32 %v1687_v63, %v3163_v18 }
 0x358   : > { %v1603_v55 = vsel %vm1602_vm12, %v1560_v45, %v1601_v52 }
 0x359   : > { %v1575_v30 = vrot.slane %v1574_v27, 2  ;;  %v1582_v31 = vrot.slane %v1581_v28, 4  ;;  %v1568_v36 = vrot.slane %v1567_v26, 1 }
 0x35b   : > { %v1576_v37 = vadd.f32 %v1575_v30, %v1574_v27  ;;  %v1583_v38 = vadd.f32 %v1582_v31, %v1581_v28  ;;  %v1569_v47 = vadd.f32 %v1568_v36, %v1567_v26 }
 0x35d   : > { %v1577_v0 = vrot.slane %v1576_v37, 1  ;;  %v1584_v44 = vrot.slane %v1583_v38, 2  ;;  %v1605_v56 = vsel %vm1604_vm13, %v1569_v47, %v1603_v55 }
 0x35f   : > { %v1585_v32 = vadd.f32 %v1584_v44, %v1583_v38  ;;  %v1578_v49 = vadd.f32 %v1577_v0, %v1576_v37 }
 0x361   : > { %v1586_v53 = vrot.slane %v1585_v32, 1  ;;  %v1607_v50 = vsel %vm1606_vm14, %v1578_v49, %v1605_v56 }
 0x363   : > { %v1587_v57 = vadd.f32 %v1586_v53, %v1585_v32 }
 0x365   : > { %v1609_v59 = vsel %vm1608_vm15, %v1587_v57, %v1607_v50 }
 0x366   : > { %1611 = vst.msk [vmem:[#allocation6] sm:$0xff] %vm771_vm6, %v1609_v59 }
 0x36d   : > { %v1613_v1 = vld [vmem:[#allocation6] sm:$0xff] }
 0x36e   : > { %v1622_v4 = vadd.f32 %v1621_v21, %v1613_v1 }
 0x370   : > { %v1689_v6 = vmul.f32 %v1688_v3, %v1622_v4 }
 0x372   : > { %v1690_v8 = vpack.c.bf16 %v1689_v6, %v1689_v6 }
 0x374   : > { %2151 = vmatmul.mubr.msk.bf16.vlgmr.msra.gmra.mrb[4].mxu0 %vm771_vm6, %v1690_v8 }
 0x447   : > { %v1760_v51 = vpop.f32.mrb[4].mxu0 }
 0x448   : > { %1766 = vst.msk [vmem:[%s3015_s9] sm:$0xff] %vm676_vm2, %v1760_v51  ;;  %v2152_v18 = vpop.f32.mrb[5].mxu0 }
 0x449   : > { %v1763_v25 = vpop.f32.mrb[6].mxu0 }
 0x44a   : > { %2481 = shalt.err (!%p2478_p3)
}
 0x44b   : > { %s2482_s10 = scalar_lea.hbm %s3286_s28, 128  ;;  %s2486_s3 = scalar_lea.hbm %s3447_s16, 256 }
 0x44c   : > { %p2483_p11 = scmp.ne.s32.totalorder %s3286_s28, %s2482_s10  ;;  %p2487_p9 = scmp.lt.u32.totalorder %s3286_s28, %s3447_s16 }
 0x44d   : > { %p2488_p10 = scmp.lt.u32.totalorder %s2486_s3, %s2482_s10  ;;  %p2490_p7 = scmp.lt.u32.totalorder %s2482_s10, %s3286_s28 }
 0x44e   : > { %p2484_p8 = pnand %p2483_p11, %p3448_p12 }
 0x44f   : > { %p2489_p1 = por %p2488_p10, %p2487_p9 }
 0x450   : > { %p2485_p13 = pneg %p2484_p8 }
 0x451   : > { %p2491_p6 = por %p2490_p7, %p2489_p1 }
 0x453   : > { %p2492_p0 = pnand %p2491_p6, %p2485_p13 }
 0x455   : > { %2495 = shalt.err (!%p2492_p0)
}
 0x456   : > { %2186 = dma.vmem_to_hbm [thread:$0]  (%p3448_p12), %s3288_s20, 128, %s3286_s28, %s1768_s7   ;;  %v2153_v7 = vpop.f32.mrb[7].mxu0 }
 0x457 PF: > { %s3449_s25 = sld [smem:[#allocation24_spill]]  ;;  %p2206_p2 = scmp.ge.s32.totalorder %s2598_s27, 2 }
 0x458   : > { %p3450_p4 = scmp.ne.s32.totalorder %s3422_s5, 0 }
 0x45a   : > { %p2202_p5 = pnand %p2206_p2, %p3450_p4 }
 0x45d   : > { %s1793_s4 = sand.u32 1, %s3449_s25  }
 0x45e   : > { %s1794_s12 = scalar_lea.sflag [#allocation11], %s1793_s4 }
 0x45f   : > { %2553 = dma.done.wait (!%p2202_p5), %s1794_s12, 128  }
 0x460   : > { %2555 = vsyncadd (!%p2202_p5), %s1794_s12, 4294967168  ;;  %s33_s27 = sadd.s32 1, %s2598_s27   ;;  %s3451_s17 = sld [smem:[#allocation22_spill]] }
 0x461   : > { %p30_p3 = scmp.ge.s32.totalorder %s33_s27, 18   ;;  %s3452_s18 = sld [smem:[#allocation23_spill]] }
 0x462   : > { %s3453_s19 = sld [smem:[#allocation32_spill]]  ;;  %s3454_s20 = sld [smem:[#allocation25_spill]] }
 0x463   : > { %s3455_s21 = sld [smem:[#allocation26_spill]]  ;;  %s3456_s22 = sld [smem:[#allocation34_spill]] }
 0x464   : > { %s3457_s23 = sld [smem:[#allocation29_spill]]  ;;  %s3458_s24 = sld [smem:[#allocation30_spill]] }
 0x465   : > { %s3459_s25 = sld [smem:[#allocation31_spill]]  ;;  %s3460_s26 = sld [smem:[#allocation33_spill]] }
 0x466   :  { %32 = sbr.rel (!%p30_p3) target bundleno = 26 (0x1a), region = 185 }
 0x46d   :  { %1799 = vsyncpa [#allocation10], 1 }
 0x46e   :  { %1801 = vsyncpa [#allocation10 + $0x1], 1 }
 0x46f   :  { %1802 = vsyncpa [#allocation13], 1 }
 0x470   :  { %1804 = vsyncpa [#allocation13 + $0x1], 1 }
 0x471   :  { %1805 = vsyncpa [#allocation16], 1 }
 0x472   :  { %1807 = vsyncpa [#allocation16 + $0x1], 1 }
 0x473   :  { %1808 = vsyncpa [#allocation11], 1 }
 0x474   :  { %1810 = vsyncpa [#allocation11 + $0x1], 1 }

</bundles_post_ra>
